<compile_context>
chip_gen: v7x
topology: tpu7x:2x2x1
jax: 0.10.0
libtpu: 0.0.40
codegen_flags: <defaults>
</compile_context>

<pallas_src>
import functools
import math

import jax
import jax.numpy as jnp
from jax.experimental import pallas as pl
from jax.experimental.pallas import tpu as pltpu


# --------------------------------- Pallas kernel ---------------------------------
def _cross_attention_kernel(v_ref, k_ref, q_ref, a_ref, wvfc_ref, bfc_ref,
                            o_ref, ctx_ref, *, heads, scale):
    """One batch-block per grid step, native [S, B, E] layout.

    v_ref    : [S, Bt, E] f32   values (also the residual source)
    k_ref    : [S, Bt, E] f32   keys
    q_ref    : [1, Bt, E] f32   single query row per batch element
    a_ref    : [E, E]    bf16   blockdiag(Wq @ Wk^T)   (score-side fold)
    wvfc_ref : [E, E]    bf16   blockdiag(Wv) @ Wfc    (value-side + fc_out fold)
    bfc_ref  : [1, E]    f32    fc_out bias
    o_ref    : [S, Bt, E]       attention output + residual
    ctx_ref  : [Bt, E]   f32    VMEM scratch for per-head context rows
    """
    S, Bt, E = v_ref.shape
    Dh = E // heads

    v = v_ref[...]                                      # [S, Bt, E] f32
    k = k_ref[...]                                      # [S, Bt, E] f32
    q = q_ref[0]                                        # [Bt, E]    f32

    # Score-side projections folded into ONE small matmul on the query row(s).
    qa = jnp.dot(q.astype(jnp.bfloat16), a_ref[...],
                 preferred_element_type=jnp.float32)    # [Bt, E] f32

    # Per-head softmax over the S keys; static unroll, slices are 128-lane aligned.
    for h in range(heads):
        sl = slice(h * Dh, (h + 1) * Dh)
        e = jnp.sum(k[:, :, sl] * qa[None, :, sl],
                    axis=-1, keepdims=True) * scale      # [S, Bt, 1]
        e = e - jnp.max(e, axis=0, keepdims=True)
        p = jnp.exp(e)
        p = p * pl.reciprocal(jnp.sum(p, axis=0, keepdims=True), approx=True)
        # softmax-weighted sum of RAW values (Wv is applied after, folded into fc_out)
        ctx_ref[:, sl] = jnp.sum(p * v[:, :, sl], axis=0)  # [Bt, Dh] f32

    # Value projection + fc_out as ONE matmul, then bias.
    y = jnp.dot(ctx_ref[...].astype(jnp.bfloat16), wvfc_ref[...],
                preferred_element_type=jnp.float32) + bfc_ref[...]   # [Bt, E]

    # All S query rows are identical -> broadcast over S and add the residual.
    o_ref[...] = (v + y[None, :, :]).astype(o_ref.dtype)


# --------------------------------- kernel wrapper ---------------------------------
def _pick_batch_block(B, max_bt=128):
    """Largest sublane-aligned (multiple of 8) batch block that divides B while
    keeping >= 2 grid steps (v7x megacore); otherwise the whole batch in 1 step."""
    best = None
    for bt in range(8, min(B // 2, max_bt) + 1, 8):
        if B % bt == 0:
            best = bt
    return best if best is not None else B


def prepare_params(params, *, heads):
    """One-time (load-time) weight preparation: algebraic folding + bf16 cast."""
    wq, wk, wv, wfc, bfc = (params["wq"], params["wk"], params["wv"],
                            params["wfc"], params["bfc"])
    Dh = wq.shape[0]
    E = wfc.shape[0]
    assert Dh * heads == E, "Embedding size needs to be divisible by heads"
    eye = jnp.eye(heads, dtype=jnp.float32)
    a_blk = jnp.kron(eye, wq @ wk.T)          # [E, E] block-diag score matrix
    w_vfc = jnp.kron(eye, wv) @ wfc           # [E, E] fused V-projection + fc_out
    return {
        "a_blk": a_blk.astype(jnp.bfloat16),
        "w_vfc": w_vfc.astype(jnp.bfloat16),
        "bfc": bfc.reshape(1, E).astype(jnp.float32),
    }


def cross_attention_forward(kparams, values, keys, query, *, heads=4, batch_block=None):
    """values, keys: [S, B, E]; query: [1, B, E]  ->  [S, B, E] (native layout, no transposes)."""
    S, B, E = values.shape
    Dh = E // heads
    assert Dh * heads == E, "Embedding size needs to be divisible by heads"
    assert Dh % 128 == 0, "head_dim must be a multiple of 128 (lane-aligned head slices)"
    assert query.shape == (1, B, E), "query must have sequence length 1 (repeat_interleave pattern)"
    assert keys.shape == (S, B, E)

    scale = 1.0 / math.sqrt(E)                # module scales by embed_size ** 0.5 (NOT head_dim)

    Bt = batch_block if batch_block is not None else _pick_batch_block(B)
    assert B % Bt == 0 and (Bt == B or Bt % 8 == 0), \
        "batch block must divide B and be a multiple of 8 (or the full batch)"
    grid = (B // Bt,)

    seq_spec = pl.BlockSpec((S, Bt, E), lambda b: (0, b, 0))
    qry_spec = pl.BlockSpec((1, Bt, E), lambda b: (0, b, 0))
    mat_spec = pl.BlockSpec((E, E), lambda b: (0, 0))
    bias_spec = pl.BlockSpec((1, E), lambda b: (0, 0))

    return pl.pallas_call(
        functools.partial(_cross_attention_kernel, heads=heads, scale=scale),
        out_shape=jax.ShapeDtypeStruct((S, B, E), values.dtype),
        grid=grid,
        in_specs=[seq_spec, seq_spec, qry_spec, mat_spec, mat_spec, bias_spec],
        out_specs=seq_spec,
        scratch_shapes=[pltpu.VMEM((Bt, E), jnp.float32)],
        compiler_params=pltpu.CompilerParams(
            dimension_semantics=("parallel",),          # batch blocks across v7x TCs
            vmem_limit_bytes=32 * 1024 * 1024),         # safe on v5e/v6e/v7x
    )(values, keys, query, kparams["a_blk"], kparams["w_vfc"], kparams["bfc"])


# -------------------------------- pure-JAX reference --------------------------------
def cross_attention_reference(params, values, keys, query, *, heads=4):
    S, B, E = values.shape
    Dh = E // heads
    ori_v = values
    v = jnp.transpose(values, (1, 0, 2))
    k = jnp.transpose(keys, (1, 0, 2))
    q = jnp.transpose(query, (1, 0, 2))
    q = jnp.repeat(q, S, axis=1)                                        # repeat_interleave
    vh = v.reshape(B, S, heads, Dh) @ params["wv"]
    kh = k.reshape(B, S, heads, Dh) @ params["wk"]
    qh = q.reshape(B, S, heads, Dh) @ params["wq"]
    energy = jnp.einsum('nqhd,nkhd->nhqk', qh, kh)
    attn = jax.nn.softmax(energy / math.sqrt(E), axis=3)
    out = jnp.einsum('nhql,nlhd->nqhd', attn, vh).reshape(B, S, E)
    out = out @ params["wfc"] + params["bfc"]
    return jnp.transpose(out, (1, 0, 2)) + ori_v


# -------------------------------- parameter init --------------------------------
def init_params(key, embed_size=512, heads=4):
    Dh = embed_size // heads

    def nrm(k, shape, scale=0.02):
        return scale * jax.random.normal(k, shape, dtype=jnp.float32)

    ks = jax.random.split(key, 5)
    return {
        # weights stored pre-transposed ([in, out] = torch weight .T); per-head
        # projections are bias-free and shared across heads (nn.Linear(head_dim, head_dim))
        "wv": nrm(ks[0], (Dh, Dh)),
        "wk": nrm(ks[1], (Dh, Dh)),
        "wq": nrm(ks[2], (Dh, Dh)),
        "wfc": nrm(ks[3], (embed_size, embed_size)),
        "bfc": nrm(ks[4], (embed_size,)),
    }


# -------------------------------------- main --------------------------------------
if __name__ == "__main__":
    S, B, E, H = 8, 2, 512, 4
    key = jax.random.PRNGKey(0)
    k_v, k_k, k_q, k_p = jax.random.split(key, 4)
    values = jax.random.normal(k_v, (S, B, E), jnp.float32)
    keys = jax.random.normal(k_k, (S, B, E), jnp.float32)
    query = jax.random.normal(k_q, (1, B, E), jnp.float32)   # text embedding, seq len 1
    params = init_params(k_p, embed_size=E, heads=H)

    # one-time weight preparation (load time), NOT per forward call
    kparams = prepare_params(params, heads=H)

    fwd = jax.jit(functools.partial(cross_attention_forward, heads=H))
    out = jax.block_until_ready(fwd(kparams, values, keys, query))

    ref = cross_attention_reference(params, values, keys, query, heads=H)
    assert out.shape == (S, B, E)
    max_err = float(jnp.max(jnp.abs(out - ref)))
    assert max_err < 5e-2, f"max abs err vs f32 reference: {max_err}"
    print("KERNEL_OK")
</pallas_src>

<mosaic_0001>
module attributes {stable_mosaic.version = 11 : i64} {
  func.func @_cross_attention_kernel(%arg0: i32, %arg1: memref<8x2x512xf32, #tpu.memory_space<vmem>>, %arg2: memref<8x2x512xf32, #tpu.memory_space<vmem>>, %arg3: memref<1x2x512xf32, #tpu.memory_space<vmem>>, %arg4: memref<512x512xbf16, #tpu.memory_space<vmem>>, %arg5: memref<512x512xbf16, #tpu.memory_space<vmem>>, %arg6: memref<1x512xf32, #tpu.memory_space<vmem>>, %arg7: memref<8x2x512xf32, #tpu.memory_space<vmem>>, %arg8: memref<2x512xf32, #tpu.memory_space<vmem>>) attributes {dimension_semantics = [#tpu.dimension_semantics<parallel>], iteration_bounds = array<i64: 1>, scalar_prefetch = 0 : i64, scratch_operands = 1 : i64, tpu.core_type = #tpu.core_type<tc>, window_params = [{transform_indices = @transform_0, window_bounds = array<i64: 8, 2, 512>}, {transform_indices = @transform_1, window_bounds = array<i64: 8, 2, 512>}, {transform_indices = @transform_2, window_bounds = array<i64: 1, 2, 512>}, {pipeline_mode = #tpu.pipeline_mode<synchronous>, transform_indices = @transform_3, window_bounds = array<i64: 512, 512>}, {pipeline_mode = #tpu.pipeline_mode<synchronous>, transform_indices = @transform_4, window_bounds = array<i64: 512, 512>}, {pipeline_mode = #tpu.pipeline_mode<synchronous>, transform_indices = @transform_5, window_bounds = array<i64: 1, 512>}, {transform_indices = @transform_6, window_bounds = array<i64: 8, 2, 512>}]} {
    %c0 = arith.constant 0 : index
    %c0_0 = arith.constant 0 : index
    %c0_1 = arith.constant 0 : index
    %0 = vector.load %arg1[%c0, %c0_0, %c0_1] : memref<8x2x512xf32, #tpu.memory_space<vmem>>, vector<8x2x512xf32>
    %c0_2 = arith.constant 0 : index
    %c0_3 = arith.constant 0 : index
    %c0_4 = arith.constant 0 : index
    %1 = vector.load %arg2[%c0_2, %c0_3, %c0_4] : memref<8x2x512xf32, #tpu.memory_space<vmem>>, vector<8x2x512xf32>
    %c0_5 = arith.constant 0 : index
    %c0_6 = arith.constant 0 : index
    %c0_7 = arith.constant 0 : index
    %2 = vector.load %arg3[%c0_5, %c0_6, %c0_7] : memref<1x2x512xf32, #tpu.memory_space<vmem>>, vector<1x2x512xf32>
    %3 = vector.shape_cast %2 : vector<1x2x512xf32> to vector<2x512xf32>
    %4 = arith.truncf %3 : vector<2x512xf32> to vector<2x512xbf16>
    %c0_8 = arith.constant 0 : index
    %c0_9 = arith.constant 0 : index
    %5 = vector.load %arg4[%c0_8, %c0_9] : memref<512x512xbf16, #tpu.memory_space<vmem>>, vector<512x512xbf16>
    %cst = arith.constant dense<0.000000e+00> : vector<2x512xf32>
    %6 = tpu.matmul %4, %5, %cst {dimension_numbers = #tpu.dot_dimension_numbers<[1], [0], [0], [1], [0, 0, 1, 1], [], []>} : vector<2x512xbf16>, vector<512x512xbf16>, vector<2x512xf32> -> vector<2x512xf32>
    %7 = vector.extract_strided_slice %1 {offsets = [0, 0, 0], sizes = [8, 2, 128], strides = [1, 1, 1]} : vector<8x2x512xf32> to vector<8x2x128xf32>
    %8 = vector.extract_strided_slice %6 {offsets = [0, 0], sizes = [2, 128], strides = [1, 1]} : vector<2x512xf32> to vector<2x128xf32>
    %9 = vector.shape_cast %8 : vector<2x128xf32> to vector<1x2x128xf32>
    %10 = vector.broadcast %9 : vector<1x2x128xf32> to vector<8x2x128xf32>
    %11 = arith.mulf %7, %10 : vector<8x2x128xf32>
    %cst_10 = arith.constant dense<0.000000e+00> : vector<8x2xf32>
    %12 = vector.multi_reduction <add>, %11, %cst_10 [2] : vector<8x2x128xf32> to vector<8x2xf32>
    %13 = vector.shape_cast %12 : vector<8x2xf32> to vector<8x2x1xf32>
    %cst_11 = arith.constant 0.0441941731 : f32
    %14 = vector.broadcast %cst_11 : f32 to vector<8x2x1xf32>
    %15 = arith.mulf %13, %14 : vector<8x2x1xf32>
    %cst_12 = arith.constant dense<0xFF800000> : vector<2x1xf32>
    %16 = vector.multi_reduction <maximumf>, %15, %cst_12 [0] : vector<8x2x1xf32> to vector<2x1xf32>
    %17 = vector.shape_cast %16 : vector<2x1xf32> to vector<1x2x1xf32>
    %18 = vector.broadcast %17 : vector<1x2x1xf32> to vector<8x2x1xf32>
    %19 = arith.subf %15, %18 : vector<8x2x1xf32>
    %20 = math.exp %19 : vector<8x2x1xf32>
    %cst_13 = arith.constant dense<0.000000e+00> : vector<2x1xf32>
    %21 = vector.multi_reduction <add>, %20, %cst_13 [0] : vector<8x2x1xf32> to vector<2x1xf32>
    %22 = vector.shape_cast %21 : vector<2x1xf32> to vector<1x2x1xf32>
    %23 = tpu.reciprocal %22 {approx = true} : vector<1x2x1xf32> -> vector<1x2x1xf32>
    %24 = vector.broadcast %23 : vector<1x2x1xf32> to vector<8x2x1xf32>
    %25 = arith.mulf %20, %24 : vector<8x2x1xf32>
    %26 = vector.extract_strided_slice %0 {offsets = [0, 0, 0], sizes = [8, 2, 128], strides = [1, 1, 1]} : vector<8x2x512xf32> to vector<8x2x128xf32>
    %27 = vector.broadcast %25 : vector<8x2x1xf32> to vector<8x2x128xf32>
    %28 = arith.mulf %27, %26 : vector<8x2x128xf32>
    %cst_14 = arith.constant dense<0.000000e+00> : vector<2x128xf32>
    %29 = vector.multi_reduction <add>, %28, %cst_14 [0] : vector<8x2x128xf32> to vector<2x128xf32>
    %c0_15 = arith.constant 0 : index
    %c0_16 = arith.constant 0 : index
    %30 = vector.load %arg8[%c0_15, %c0_16] : memref<2x512xf32, #tpu.memory_space<vmem>>, vector<2x128xf32>
    tpu.vector_store %arg8[%c0_15, %c0_16], %29 {strides = array<i32>} : memref<2x512xf32, #tpu.memory_space<vmem>>, vector<2x128xf32>,
    %31 = vector.extract_strided_slice %1 {offsets = [0, 0, 128], sizes = [8, 2, 128], strides = [1, 1, 1]} : vector<8x2x512xf32> to vector<8x2x128xf32>
    %32 = vector.extract_strided_slice %6 {offsets = [0, 128], sizes = [2, 128], strides = [1, 1]} : vector<2x512xf32> to vector<2x128xf32>
    %33 = vector.shape_cast %32 : vector<2x128xf32> to vector<1x2x128xf32>
    %34 = vector.broadcast %33 : vector<1x2x128xf32> to vector<8x2x128xf32>
    %35 = arith.mulf %31, %34 : vector<8x2x128xf32>
    %cst_17 = arith.constant dense<0.000000e+00> : vector<8x2xf32>
    %36 = vector.multi_reduction <add>, %35, %cst_17 [2] : vector<8x2x128xf32> to vector<8x2xf32>
    %37 = vector.shape_cast %36 : vector<8x2xf32> to vector<8x2x1xf32>
    %cst_18 = arith.constant 0.0441941731 : f32
    %38 = vector.broadcast %cst_18 : f32 to vector<8x2x1xf32>
    %39 = arith.mulf %37, %38 : vector<8x2x1xf32>
    %cst_19 = arith.constant dense<0xFF800000> : vector<2x1xf32>
    %40 = vector.multi_reduction <maximumf>, %39, %cst_19 [0] : vector<8x2x1xf32> to vector<2x1xf32>
    %41 = vector.shape_cast %40 : vector<2x1xf32> to vector<1x2x1xf32>
    %42 = vector.broadcast %41 : vector<1x2x1xf32> to vector<8x2x1xf32>
    %43 = arith.subf %39, %42 : vector<8x2x1xf32>
    %44 = math.exp %43 : vector<8x2x1xf32>
    %cst_20 = arith.constant dense<0.000000e+00> : vector<2x1xf32>
    %45 = vector.multi_reduction <add>, %44, %cst_20 [0] : vector<8x2x1xf32> to vector<2x1xf32>
    %46 = vector.shape_cast %45 : vector<2x1xf32> to vector<1x2x1xf32>
    %47 = tpu.reciprocal %46 {approx = true} : vector<1x2x1xf32> -> vector<1x2x1xf32>
    %48 = vector.broadcast %47 : vector<1x2x1xf32> to vector<8x2x1xf32>
    %49 = arith.mulf %44, %48 : vector<8x2x1xf32>
    %50 = vector.extract_strided_slice %0 {offsets = [0, 0, 128], sizes = [8, 2, 128], strides = [1, 1, 1]} : vector<8x2x512xf32> to vector<8x2x128xf32>
    %51 = vector.broadcast %49 : vector<8x2x1xf32> to vector<8x2x128xf32>
    %52 = arith.mulf %51, %50 : vector<8x2x128xf32>
    %cst_21 = arith.constant dense<0.000000e+00> : vector<2x128xf32>
    %53 = vector.multi_reduction <add>, %52, %cst_21 [0] : vector<8x2x128xf32> to vector<2x128xf32>
    %c0_22 = arith.constant 0 : index
    %c128 = arith.constant 128 : index
    %54 = vector.load %arg8[%c0_22, %c128] : memref<2x512xf32, #tpu.memory_space<vmem>>, vector<2x128xf32>
    tpu.vector_store %arg8[%c0_22, %c128], %53 {strides = array<i32>} : memref<2x512xf32, #tpu.memory_space<vmem>>, vector<2x128xf32>,
    %55 = vector.extract_strided_slice %1 {offsets = [0, 0, 256], sizes = [8, 2, 128], strides = [1, 1, 1]} : vector<8x2x512xf32> to vector<8x2x128xf32>
    %56 = vector.extract_strided_slice %6 {offsets = [0, 256], sizes = [2, 128], strides = [1, 1]} : vector<2x512xf32> to vector<2x128xf32>
    %57 = vector.shape_cast %56 : vector<2x128xf32> to vector<1x2x128xf32>
    %58 = vector.broadcast %57 : vector<1x2x128xf32> to vector<8x2x128xf32>
    %59 = arith.mulf %55, %58 : vector<8x2x128xf32>
    %cst_23 = arith.constant dense<0.000000e+00> : vector<8x2xf32>
    %60 = vector.multi_reduction <add>, %59, %cst_23 [2] : vector<8x2x128xf32> to vector<8x2xf32>
    %61 = vector.shape_cast %60 : vector<8x2xf32> to vector<8x2x1xf32>
    %cst_24 = arith.constant 0.0441941731 : f32
    %62 = vector.broadcast %cst_24 : f32 to vector<8x2x1xf32>
    %63 = arith.mulf %61, %62 : vector<8x2x1xf32>
    %cst_25 = arith.constant dense<0xFF800000> : vector<2x1xf32>
    %64 = vector.multi_reduction <maximumf>, %63, %cst_25 [0] : vector<8x2x1xf32> to vector<2x1xf32>
    %65 = vector.shape_cast %64 : vector<2x1xf32> to vector<1x2x1xf32>
    %66 = vector.broadcast %65 : vector<1x2x1xf32> to vector<8x2x1xf32>
    %67 = arith.subf %63, %66 : vector<8x2x1xf32>
    %68 = math.exp %67 : vector<8x2x1xf32>
    %cst_26 = arith.constant dense<0.000000e+00> : vector<2x1xf32>
    %69 = vector.multi_reduction <add>, %68, %cst_26 [0] : vector<8x2x1xf32> to vector<2x1xf32>
    %70 = vector.shape_cast %69 : vector<2x1xf32> to vector<1x2x1xf32>
    %71 = tpu.reciprocal %70 {approx = true} : vector<1x2x1xf32> -> vector<1x2x1xf32>
    %72 = vector.broadcast %71 : vector<1x2x1xf32> to vector<8x2x1xf32>
    %73 = arith.mulf %68, %72 : vector<8x2x1xf32>
    %74 = vector.extract_strided_slice %0 {offsets = [0, 0, 256], sizes = [8, 2, 128], strides = [1, 1, 1]} : vector<8x2x512xf32> to vector<8x2x128xf32>
    %75 = vector.broadcast %73 : vector<8x2x1xf32> to vector<8x2x128xf32>
    %76 = arith.mulf %75, %74 : vector<8x2x128xf32>
    %cst_27 = arith.constant dense<0.000000e+00> : vector<2x128xf32>
    %77 = vector.multi_reduction <add>, %76, %cst_27 [0] : vector<8x2x128xf32> to vector<2x128xf32>
    %c0_28 = arith.constant 0 : index
    %c256 = arith.constant 256 : index
    %78 = vector.load %arg8[%c0_28, %c256] : memref<2x512xf32, #tpu.memory_space<vmem>>, vector<2x128xf32>
    tpu.vector_store %arg8[%c0_28, %c256], %77 {strides = array<i32>} : memref<2x512xf32, #tpu.memory_space<vmem>>, vector<2x128xf32>,
    %79 = vector.extract_strided_slice %1 {offsets = [0, 0, 384], sizes = [8, 2, 128], strides = [1, 1, 1]} : vector<8x2x512xf32> to vector<8x2x128xf32>
    %80 = vector.extract_strided_slice %6 {offsets = [0, 384], sizes = [2, 128], strides = [1, 1]} : vector<2x512xf32> to vector<2x128xf32>
    %81 = vector.shape_cast %80 : vector<2x128xf32> to vector<1x2x128xf32>
    %82 = vector.broadcast %81 : vector<1x2x128xf32> to vector<8x2x128xf32>
    %83 = arith.mulf %79, %82 : vector<8x2x128xf32>
    %cst_29 = arith.constant dense<0.000000e+00> : vector<8x2xf32>
    %84 = vector.multi_reduction <add>, %83, %cst_29 [2] : vector<8x2x128xf32> to vector<8x2xf32>
    %85 = vector.shape_cast %84 : vector<8x2xf32> to vector<8x2x1xf32>
    %cst_30 = arith.constant 0.0441941731 : f32
    %86 = vector.broadcast %cst_30 : f32 to vector<8x2x1xf32>
    %87 = arith.mulf %85, %86 : vector<8x2x1xf32>
    %cst_31 = arith.constant dense<0xFF800000> : vector<2x1xf32>
    %88 = vector.multi_reduction <maximumf>, %87, %cst_31 [0] : vector<8x2x1xf32> to vector<2x1xf32>
    %89 = vector.shape_cast %88 : vector<2x1xf32> to vector<1x2x1xf32>
    %90 = vector.broadcast %89 : vector<1x2x1xf32> to vector<8x2x1xf32>
    %91 = arith.subf %87, %90 : vector<8x2x1xf32>
    %92 = math.exp %91 : vector<8x2x1xf32>
    %cst_32 = arith.constant dense<0.000000e+00> : vector<2x1xf32>
    %93 = vector.multi_reduction <add>, %92, %cst_32 [0] : vector<8x2x1xf32> to vector<2x1xf32>
    %94 = vector.shape_cast %93 : vector<2x1xf32> to vector<1x2x1xf32>
    %95 = tpu.reciprocal %94 {approx = true} : vector<1x2x1xf32> -> vector<1x2x1xf32>
    %96 = vector.broadcast %95 : vector<1x2x1xf32> to vector<8x2x1xf32>
    %97 = arith.mulf %92, %96 : vector<8x2x1xf32>
    %98 = vector.extract_strided_slice %0 {offsets = [0, 0, 384], sizes = [8, 2, 128], strides = [1, 1, 1]} : vector<8x2x512xf32> to vector<8x2x128xf32>
    %99 = vector.broadcast %97 : vector<8x2x1xf32> to vector<8x2x128xf32>
    %100 = arith.mulf %99, %98 : vector<8x2x128xf32>
    %cst_33 = arith.constant dense<0.000000e+00> : vector<2x128xf32>
    %101 = vector.multi_reduction <add>, %100, %cst_33 [0] : vector<8x2x128xf32> to vector<2x128xf32>
    %c0_34 = arith.constant 0 : index
    %c384 = arith.constant 384 : index
    %102 = vector.load %arg8[%c0_34, %c384] : memref<2x512xf32, #tpu.memory_space<vmem>>, vector<2x128xf32>
    tpu.vector_store %arg8[%c0_34, %c384], %101 {strides = array<i32>} : memref<2x512xf32, #tpu.memory_space<vmem>>, vector<2x128xf32>,
    %c0_35 = arith.constant 0 : index
    %c0_36 = arith.constant 0 : index
    %103 = vector.load %arg8[%c0_35, %c0_36] : memref<2x512xf32, #tpu.memory_space<vmem>>, vector<2x512xf32>
    %104 = arith.truncf %103 : vector<2x512xf32> to vector<2x512xbf16>
    %c0_37 = arith.constant 0 : index
    %c0_38 = arith.constant 0 : index
    %105 = vector.load %arg5[%c0_37, %c0_38] : memref<512x512xbf16, #tpu.memory_space<vmem>>, vector<512x512xbf16>
    %cst_39 = arith.constant dense<0.000000e+00> : vector<2x512xf32>
    %106 = tpu.matmul %104, %105, %cst_39 {dimension_numbers = #tpu.dot_dimension_numbers<[1], [0], [0], [1], [0, 0, 1, 1], [], []>} : vector<2x512xbf16>, vector<512x512xbf16>, vector<2x512xf32> -> vector<2x512xf32>
    %c0_40 = arith.constant 0 : index
    %c0_41 = arith.constant 0 : index
    %107 = vector.load %arg6[%c0_40, %c0_41] : memref<1x512xf32, #tpu.memory_space<vmem>>, vector<1x512xf32>
    %108 = vector.broadcast %107 : vector<1x512xf32> to vector<2x512xf32>
    %109 = arith.addf %106, %108 : vector<2x512xf32>
    %110 = vector.shape_cast %109 : vector<2x512xf32> to vector<1x2x512xf32>
    %111 = vector.broadcast %110 : vector<1x2x512xf32> to vector<8x2x512xf32>
    %112 = arith.addf %0, %111 : vector<8x2x512xf32>
    %c0_42 = arith.constant 0 : index
    %c0_43 = arith.constant 0 : index
    %c0_44 = arith.constant 0 : index
    %113 = vector.load %arg7[%c0_42, %c0_43, %c0_44] : memref<8x2x512xf32, #tpu.memory_space<vmem>>, vector<8x2x512xf32>
    tpu.vector_store %arg7[%c0_42, %c0_43, %c0_44], %112 {strides = array<i32>} : memref<8x2x512xf32, #tpu.memory_space<vmem>>, vector<8x2x512xf32>,
    return
  }
  func.func @transform_0(%arg0: i32) -> (i32, i32, i32) {
    %c0_i32 = arith.constant 0 : i32
    %c0_i32_0 = arith.constant 0 : i32
    %c0_i32_1 = arith.constant 0 : i32
    return %c0_i32, %arg0, %c0_i32_0 : i32, i32, i32
  }
  func.func @transform_1(%arg0: i32) -> (i32, i32, i32) {
    %c0_i32 = arith.constant 0 : i32
    %c0_i32_0 = arith.constant 0 : i32
    %c0_i32_1 = arith.constant 0 : i32
    return %c0_i32, %arg0, %c0_i32_0 : i32, i32, i32
  }
  func.func @transform_2(%arg0: i32) -> (i32, i32, i32) {
    %c0_i32 = arith.constant 0 : i32
    %c0_i32_0 = arith.constant 0 : i32
    %c0_i32_1 = arith.constant 0 : i32
    return %c0_i32, %arg0, %c0_i32_0 : i32, i32, i32
  }
  func.func @transform_3(%arg0: i32) -> (i32, i32) {
    %c0_i32 = arith.constant 0 : i32
    %c0_i32_0 = arith.constant 0 : i32
    %c0_i32_1 = arith.constant 0 : i32
    return %c0_i32, %c0_i32_0 : i32, i32
  }
  func.func @transform_4(%arg0: i32) -> (i32, i32) {
    %c0_i32 = arith.constant 0 : i32
    %c0_i32_0 = arith.constant 0 : i32
    %c0_i32_1 = arith.constant 0 : i32
    return %c0_i32, %c0_i32_0 : i32, i32
  }
  func.func @transform_5(%arg0: i32) -> (i32, i32) {
    %c0_i32 = arith.constant 0 : i32
    %c0_i32_0 = arith.constant 0 : i32
    %c0_i32_1 = arith.constant 0 : i32
    return %c0_i32, %c0_i32_0 : i32, i32
  }
  func.func @transform_6(%arg0: i32) -> (i32, i32, i32) {
    %c0_i32 = arith.constant 0 : i32
    %c0_i32_0 = arith.constant 0 : i32
    %c0_i32_1 = arith.constant 0 : i32
    return %c0_i32, %arg0, %c0_i32_0 : i32, i32, i32
  }
}

</mosaic_0001>

<bundles_post_ra>
// kernel: cross_attention_forward.1
= control target key start
LH: loop header
LB: loop body
LE: loop exit
PB: predicated region body
PF: predicated region fallthrough
CT: control target
= control target key end

     0   :  { %11 = vsyncpa [#allocation4], 0  ;;  %s4493_s0 = inlined_call_operand.hbm [shape: f32[8,2,512], index: 0, kind: input, shape index: {}]   ;;  %s4494_s1 = inlined_call_operand.hbm [shape: f32[8,2,512], index: 1, kind: input, shape index: {}]   ;;  %s4495_s2 = inlined_call_operand.vmem [shape: f32[1,2,512], index: 2, kind: input, shape index: {}]   ;;  %s4496_s3 = inlined_call_operand.hbm [shape: bf16[512,512], index: 3, kind: input, shape index: {}]   ;;  %s4497_s4 = inlined_call_operand.hbm [shape: bf16[512,512], index: 4, kind: input, shape index: {}]   ;;  %s4498_s5 = inlined_call_operand.hbm [shape: f32[1,512], index: 5, kind: input, shape index: {}]   ;;  %s4499_s6 = inlined_call_operand.hbm [shape: f32[8,2,512], index: 6, kind: output, shape index: {}]  }
   0x1   :  { %12 = vsyncpa [#allocation7], 0 }
   0x2   :  { %13 = vsyncpa [#allocation10], 0 }
   0x3   :  { %14 = vsyncpa [#allocation5], 0  ;;  %s3729_s21 = smov [#allocation6]   ;;  %s3589_s25 = scalar_lea.hbm %s4494_s1, 1024 }
   0x4   :  { %s32_s22 = sshll.u32 %s3729_s21, 4  ;;  %p3590_p0 = scmp.ne.s32.totalorder %s4494_s1, %s3589_s25  ;;  %s33_s22 = int_to_ptr.vmem [resolvable:$true] %s32_s22 }
   0x5   :  { %p3593_p1 = scmp.lt.u32.totalorder %s3589_s25, %s4494_s1 }
   0x7   :  { %p3595_p2 = pnand %p3593_p1, %p3590_p0 }
   0x9   :  { %3598 = shalt.err (!%p3595_p2)
}
   0xa   :  { %s3599_s30 = scalar_lea.vmem %s33_s22, 1024  ;;  %p3604_p4 = scmp.lt.s32.totalorder %s33_s22, %s33_s22 }
   0xb   :  { %p3600_p3 = scmp.ne.s32.totalorder %s33_s22, %s3599_s30  ;;  %p3605_p5 = scmp.lt.s32.totalorder %s3599_s30, %s3599_s30 }
   0xd   :  { %p3606_p6 = por %p3605_p5, %p3604_p4 }
   0xf   :  { %p3607_p7 = pnand %p3606_p6, %p3600_p3 }
  0x11   :  { %3610 = shalt.err (!%p3607_p7)
}
  0x12   :  { %s3730_s7 = smov 128   ;;  %s3731_s8 = smov 8  }
  0x13   :  { %38 = dma.hbm_to_vmem [thread:$0]  %s4494_s1, 1024, %s33_s22, [#allocation7], %s3730_s7, %s3730_s7, %s3731_s8  }
  0x14   :  { %s3732_s11 = smov [#allocation9]   ;;  %s3733_s13 = smov [#allocation3]  }
  0x15   :  { %s58_s12 = sshll.u32 %s3732_s11, 4  ;;  %s20_s14 = sshll.u32 %s3733_s13, 4  ;;  %s59_s12 = int_to_ptr.vmem [resolvable:$true] %s58_s12  ;;  %s21_s14 = int_to_ptr.vmem [resolvable:$true] %s20_s14 }
  0x16   :  { %s3611_s17 = scalar_lea.hbm %s4497_s4, 16384 }
  0x17   :  { %p3612_p8 = scmp.ne.s32.totalorder %s4497_s4, %s3611_s17  ;;  %p3615_p9 = scmp.lt.u32.totalorder %s3611_s17, %s4497_s4 }
  0x19   :  { %p3617_p10 = pnand %p3615_p9, %p3612_p8 }
  0x1b   :  { %3620 = shalt.err (!%p3617_p10)
}
  0x1c   :  { %s3621_s1 = scalar_lea.vmem %s59_s12, 16384  ;;  %p3626_p12 = scmp.lt.s32.totalorder %s59_s12, %s59_s12 }
  0x1d   :  { %p3622_p11 = scmp.ne.s32.totalorder %s59_s12, %s3621_s1  ;;  %p3627_p13 = scmp.lt.s32.totalorder %s3621_s1, %s3621_s1 }
  0x1f   :  { %p3628_p0 = por %p3627_p13, %p3626_p12 }
  0x21   :  { %p3629_p1 = pnand %p3628_p0, %p3622_p11 }
  0x23   :  { %3632 = shalt.err (!%p3629_p1)
}
  0x24   :  { %s3734_s22 = smov 256   ;;  %s3735_s23 = smov 16  }
  0x25   :  { %64 = dma.hbm_to_vmem [thread:$0]  %s4497_s4, 16384, %s59_s12, [#allocation10], %s3734_s22, %s3734_s22, %s3735_s23  }
  0x26   :  { %s3633_s28 = scalar_lea.hbm %s4493_s0, 1024 }
  0x27   :  { %p3634_p2 = scmp.ne.s32.totalorder %s4493_s0, %s3633_s28  ;;  %p3637_p3 = scmp.lt.u32.totalorder %s3633_s28, %s4493_s0 }
  0x29   :  { %p3639_p4 = pnand %p3637_p3, %p3634_p2 }
  0x2b   :  { %3642 = shalt.err (!%p3639_p4)
}
  0x2c   :  { %s3643_s11 = scalar_lea.vmem %s21_s14, 1024  ;;  %p3648_p6 = scmp.lt.s32.totalorder %s21_s14, %s21_s14 }
  0x2d   :  { %p3644_p5 = scmp.ne.s32.totalorder %s21_s14, %s3643_s11  ;;  %p3649_p7 = scmp.lt.s32.totalorder %s3643_s11, %s3643_s11 }
  0x2f   :  { %p3650_p8 = por %p3649_p7, %p3648_p6 }
  0x31   :  { %p3651_p9 = pnand %p3650_p8, %p3644_p5 }
  0x33   :  { %3654 = shalt.err (!%p3651_p9)
}
  0x34   :  { %26 = dma.hbm_to_vmem [thread:$0]  %s4493_s0, 1024, %s21_s14, [#allocation4], %s3730_s7, %s3730_s7, %s3731_s8  }
  0x35   :  { %s3736_s13 = smov [#allocation8]   ;;  %s3737_s16 = smov [#allocation11]  }
  0x36   :  { %s46_s15 = sshll.u32 %s3736_s13, 4  ;;  %s71_s17 = sshll.u32 %s3737_s16, 4  ;;  %s47_s15 = int_to_ptr.vmem [resolvable:$true] %s46_s15  ;;  %s72_s17 = int_to_ptr.vmem [resolvable:$true] %s71_s17 }
  0x37   :  { %s3655_s20 = scalar_lea.hbm %s4496_s3, 16384 }
  0x38   :  { %p3656_p10 = scmp.ne.s32.totalorder %s4496_s3, %s3655_s20  ;;  %p3659_p11 = scmp.lt.u32.totalorder %s3655_s20, %s4496_s3 }
  0x3a   :  { %p3661_p12 = pnand %p3659_p11, %p3656_p10 }
  0x3c   :  { %3664 = shalt.err (!%p3661_p12)
}
  0x3d   :  { %s3665_s0 = scalar_lea.vmem %s47_s15, 16384  ;;  %p3670_p0 = scmp.lt.s32.totalorder %s47_s15, %s47_s15 }
  0x3e   :  { %p3666_p13 = scmp.ne.s32.totalorder %s47_s15, %s3665_s0  ;;  %p3671_p1 = scmp.lt.s32.totalorder %s3665_s0, %s3665_s0 }
  0x40   :  { %p3672_p2 = por %p3671_p1, %p3670_p0 }
  0x42   :  { %p3673_p3 = pnand %p3672_p2, %p3666_p13 }
  0x44   :  { %3676 = shalt.err (!%p3673_p3)
}
  0x45   :  { %52 = dma.hbm_to_vmem [thread:$0]  %s4496_s3, 16384, %s47_s15, [#allocation7], %s3734_s22, %s3734_s22, %s3735_s23  }
  0x46   :  { %s3677_s29 = scalar_lea.hbm %s4498_s5, 64 }
  0x47   :  { %p3678_p4 = scmp.ne.s32.totalorder %s4498_s5, %s3677_s29  ;;  %p3681_p5 = scmp.lt.u32.totalorder %s3677_s29, %s4498_s5 }
  0x49   :  { %p3683_p6 = pnand %p3681_p5, %p3678_p4 }
  0x4b   :  { %3686 = shalt.err (!%p3683_p6)
}
  0x4c   :  { %s3687_s4 = scalar_lea.vmem %s72_s17, 64  ;;  %p3692_p8 = scmp.lt.s32.totalorder %s72_s17, %s72_s17 }
  0x4d   :  { %p3688_p7 = scmp.ne.s32.totalorder %s72_s17, %s3687_s4  ;;  %p3693_p9 = scmp.lt.s32.totalorder %s3687_s4, %s3687_s4 }
  0x4f   :  { %p3694_p10 = por %p3693_p9, %p3692_p8 }
  0x51   :  { %p3695_p11 = pnand %p3694_p10, %p3688_p7 }
  0x53   :  { %3698 = shalt.err (!%p3695_p11)
}
  0x54   :  { %74 = dma.hbm_to_vmem [thread:$0]  %s4498_s5, 64, %s72_s17, [#allocation10]  }
  0x55   :  { %3721 = dma.done.wait [#allocation4], 1024  }
  0x56   :  { %3722 = vsyncadd [#allocation4], 4294966272 }
  0x57   :  { %3723 = dma.done.wait [#allocation7], 17408  }
  0x58   :  { %3724 = vsyncadd [#allocation7], 4294949888 }
  0x59   :  { %3725 = dma.done.wait [#allocation10], 16448  }
  0x5a   :  { %3726 = vsyncadd [#allocation10], 4294950848  ;;  %v3123_v0 = vld [vmem:[#allocation8 + $0x4] ss:$16 sps:$4 sm:$0xff]   ;;  %v3125_v1 = vld [vmem:[#allocation8 + $0xc] ss:$16 sps:$4 sm:$0xff]   ;;  %v112_v38 = vlaneseq }
  0x5b   :  { %901 = vmatprep.subr.bf16.mxu0 %v3123_v0  ;;  %v3127_v2 = vld [vmem:[#allocation8] ss:$16 sps:$4 sm:$0xff]   ;;  %v3128_v3 = vld [vmem:[#allocation8 + $0x8] ss:$16 sps:$4 sm:$0xff]   ;;  %983 = vmatprep.subr.bf16.mxu1 %v3125_v1  ;;  %v3129_v4 = vld [vmem:[#allocation8 + $0x24] ss:$16 sps:$4 sm:$0xff]  }
  0x5c   :  { %902 = vmatpush1.bf16.msra.mxu0 %v3127_v2  ;;  %984 = vmatpush1.bf16.msra.mxu1 %v3128_v3  ;;  %v3131_v5 = vld [vmem:[#allocation8 + $0x2c] ss:$16 sps:$4 sm:$0xff]   ;;  %v3133_v6 = vld [vmem:[#allocation8 + $0x20] ss:$16 sps:$4 sm:$0xff]   ;;  %v3134_v7 = vld [vmem:[#allocation8 + $0x28] ss:$16 sps:$4 sm:$0xff]  }
  0x5d   :  { %903 = vmatprep.subr.bf16.mxu0 %v3129_v4  ;;  %985 = vmatprep.subr.bf16.mxu1 %v3131_v5  ;;  %v3135_v8 = vld [vmem:[#allocation8 + $0x44] ss:$16 sps:$4 sm:$0xff]   ;;  %v3137_v9 = vld [vmem:[#allocation8 + $0x4c] ss:$16 sps:$4 sm:$0xff]   ;;  %v3139_v10 = vld [vmem:[#allocation8 + $0x40] ss:$16 sps:$4 sm:$0xff]  }
  0x5e   :  { %v3140_v11 = vld [vmem:[#allocation8 + $0x48] ss:$16 sps:$4 sm:$0xff]   ;;  %v3141_v12 = vld [vmem:[#allocation8 + $0x64] ss:$16 sps:$4 sm:$0xff]   ;;  %v3143_v13 = vld [vmem:[#allocation8 + $0x6c] ss:$16 sps:$4 sm:$0xff]  }
  0x5f   :  { %v3145_v14 = vld [vmem:[#allocation8 + $0x60] ss:$16 sps:$4 sm:$0xff]   ;;  %v3146_v15 = vld [vmem:[#allocation8 + $0x68] ss:$16 sps:$4 sm:$0xff]   ;;  %v3147_v16 = vld [vmem:[#allocation8 + $0x84] ss:$16 sps:$4 sm:$0xff]  }
  0x60   :  { %904 = vmatpush1.bf16.msra.mxu0 %v3133_v6  ;;  %986 = vmatpush1.bf16.msra.mxu1 %v3134_v7  ;;  %v3149_v17 = vld [vmem:[#allocation8 + $0x8c] ss:$16 sps:$4 sm:$0xff]   ;;  %v3151_v18 = vld [vmem:[#allocation8 + $0x80] ss:$16 sps:$4 sm:$0xff]   ;;  %v3152_v19 = vld [vmem:[#allocation8 + $0x88] ss:$16 sps:$4 sm:$0xff]  }
  0x61   :  { %905 = vmatprep.subr.bf16.mxu0 %v3135_v8  ;;  %987 = vmatprep.subr.bf16.mxu1 %v3137_v9  ;;  %v3153_v20 = vld [vmem:[#allocation8 + $0xa4] ss:$16 sps:$4 sm:$0xff]   ;;  %v3155_v21 = vld [vmem:[#allocation8 + $0xac] ss:$16 sps:$4 sm:$0xff]   ;;  %v3157_v22 = vld [vmem:[#allocation8 + $0xa0] ss:$16 sps:$4 sm:$0xff]  }
  0x62   :  { %v3158_v23 = vld [vmem:[#allocation8 + $0xa8] ss:$16 sps:$4 sm:$0xff]   ;;  %v3159_v24 = vld [vmem:[#allocation8 + $0xc4] ss:$16 sps:$4 sm:$0xff]   ;;  %v3161_v25 = vld [vmem:[#allocation8 + $0xcc] ss:$16 sps:$4 sm:$0xff]  }
  0x63   :  { %v3163_v26 = vld [vmem:[#allocation8 + $0xc0] ss:$16 sps:$4 sm:$0xff]   ;;  %v3164_v27 = vld [vmem:[#allocation8 + $0xc8] ss:$16 sps:$4 sm:$0xff]   ;;  %v3165_v28 = vld [vmem:[#allocation8 + $0xe4] ss:$16 sps:$4 sm:$0xff]  }
  0x64   :  { %906 = vmatpush1.bf16.msra.mxu0 %v3139_v10  ;;  %988 = vmatpush1.bf16.msra.mxu1 %v3140_v11  ;;  %v3167_v29 = vld [vmem:[#allocation8 + $0xec] ss:$16 sps:$4 sm:$0xff]   ;;  %v3169_v30 = vld [vmem:[#allocation8 + $0xe0] ss:$16 sps:$4 sm:$0xff]   ;;  %v3170_v31 = vld [vmem:[#allocation8 + $0xe8] ss:$16 sps:$4 sm:$0xff]  }
  0x65   :  { %907 = vmatprep.subr.bf16.mxu0 %v3141_v12  ;;  %989 = vmatprep.subr.bf16.mxu1 %v3143_v13  ;;  %v3171_v32 = vld [vmem:[#allocation8 + $0x104] ss:$16 sps:$4 sm:$0xff]   ;;  %v3173_v33 = vld [vmem:[#allocation8 + $0x10c] ss:$16 sps:$4 sm:$0xff]   ;;  %v3175_v34 = vld [vmem:[#allocation8 + $0x100] ss:$16 sps:$4 sm:$0xff]  }
  0x66   :  { %v3176_v35 = vld [vmem:[#allocation8 + $0x108] ss:$16 sps:$4 sm:$0xff]   ;;  %v3738_v36 = vmov 1983009808   ;;  %v3177_v39 = vld [vmem:[#allocation8 + $0x124] ss:$16 sps:$4 sm:$0xff]  }
  0x67   :  { %v110_v37 = vunpack.c.l.s4 %v3738_v36  ;;  %v3179_v40 = vld [vmem:[#allocation8 + $0x12c] ss:$16 sps:$4 sm:$0xff]   ;;  %v3181_v41 = vld [vmem:[#allocation8 + $0x120] ss:$16 sps:$4 sm:$0xff]   ;;  %v3847_v43 = vshrl.u32 %v112_v38, 7  ;;  %vm1073_vm0 = vcmask 1041408  }
  0x68   :  { %908 = vmatpush1.bf16.msra.mxu0 %v3145_v14  ;;  %990 = vmatpush1.bf16.msra.mxu1 %v3146_v15  ;;  %v3182_v44 = vld [vmem:[#allocation8 + $0x128] ss:$16 sps:$4 sm:$0xff]   ;;  %v3183_v45 = vld [vmem:[#allocation8 + $0x144] ss:$16 sps:$4 sm:$0xff]   ;;  %v3185_v46 = vld [vmem:[#allocation8 + $0x14c] ss:$16 sps:$4 sm:$0xff]  }
  0x69   :  { %909 = vmatprep.subr.bf16.mxu0 %v3147_v16  ;;  %991 = vmatprep.subr.bf16.mxu1 %v3149_v17  ;;  %v111_v42 = vunpack.c.0.s8 %v110_v37  ;;  %v3187_v47 = vld [vmem:[#allocation8 + $0x140] ss:$16 sps:$4 sm:$0xff]   ;;  %v3188_v48 = vld [vmem:[#allocation8 + $0x148] ss:$16 sps:$4 sm:$0xff]   ;;  %v3189_v50 = vld [vmem:[#allocation8 + $0x164] ss:$16 sps:$4 sm:$0xff]  }
  0x6a   :  { %v3191_v51 = vld [vmem:[#allocation8 + $0x16c] ss:$16 sps:$4 sm:$0xff]   ;;  %v3193_v53 = vld [vmem:[#allocation8 + $0x160] ss:$16 sps:$4 sm:$0xff]   ;;  %v3194_v55 = vld [vmem:[#allocation8 + $0x168] ss:$16 sps:$4 sm:$0xff]  }
  0x6b   :  { %v3850_v49 = vsub.s32 %v111_v42, %v3847_v43  ;;  %v106_v52 = vld [vmem:[%s4495_s2] sm:$0xff]  ;;  %v3195_v56 = vld [vmem:[#allocation8 + $0x184] ss:$16 sps:$4 sm:$0xff]   ;;  %v3199_v59 = vld [vmem:[#allocation8 + $0x180] ss:$16 sps:$4 sm:$0xff]   ;;  %s3739_s2 = smov [#allocation12]  }
  0x6c   :  { %910 = vmatpush1.bf16.msra.mxu0 %v3151_v18  ;;  %992 = vmatpush1.bf16.msra.mxu1 %v3152_v19  ;;  %v3197_v57 = vld [vmem:[#allocation8 + $0x18c] ss:$16 sps:$4 sm:$0xff]   ;;  %v3200_v61 = vld [vmem:[#allocation8 + $0x188] ss:$16 sps:$4 sm:$0xff]   ;;  %v3201_v62 = vld [vmem:[#allocation8 + $0x1a4] ss:$16 sps:$4 sm:$0xff]   ;;  %v108_v4 = vcombine.high %v106_v52, %v106_v52 }
  0x6d   :  { %911 = vmatprep.subr.bf16.mxu0 %v3153_v20  ;;  %993 = vmatprep.subr.bf16.mxu1 %v3155_v21  ;;  %v115_v54 = vrot.slane %v106_v52, %v3850_v49  ;;  %v3203_v63 = vld [vmem:[#allocation8 + $0x1ac] ss:$16 sps:$4 sm:$0xff]   ;;  %v3205_v0 = vld [vmem:[#allocation8 + $0x1a0] ss:$16 sps:$4 sm:$0xff]   ;;  %v3206_v1 = vld [vmem:[#allocation8 + $0x1a8] ss:$16 sps:$4 sm:$0xff]  }
  0x6e   :  { %v3207_v2 = vld [vmem:[#allocation8 + $0x1c4] ss:$16 sps:$4 sm:$0xff]   ;;  %v3209_v3 = vld [vmem:[#allocation8 + $0x1cc] ss:$16 sps:$4 sm:$0xff]   ;;  %v3211_v5 = vld [vmem:[#allocation8 + $0x1c0] ss:$16 sps:$4 sm:$0xff]   ;;  %v3857_v9 = vrot.slane %v108_v4, %v3850_v49 }
  0x6f   :  { %v123_v58 = vcombine.high %v115_v54, %v115_v54  ;;  %v3212_v6 = vld [vmem:[#allocation8 + $0x1c8] ss:$16 sps:$4 sm:$0xff]   ;;  %v3213_v7 = vld [vmem:[#allocation8 + $0x1e4] ss:$16 sps:$4 sm:$0xff]   ;;  %v3215_v8 = vld [vmem:[#allocation8 + $0x1ec] ss:$16 sps:$4 sm:$0xff]   ;;  %v129_v16 = vpack.c.bf16 %v115_v54, %v115_v54 }
  0x70   :  { %912 = vmatpush1.bf16.msra.mxu0 %v3157_v22  ;;  %994 = vmatpush1.bf16.msra.mxu1 %v3158_v23  ;;  %v3217_v10 = vld [vmem:[#allocation8 + $0x1e0] ss:$16 sps:$4 sm:$0xff]   ;;  %v3218_v11 = vld [vmem:[#allocation8 + $0x1e8] ss:$16 sps:$4 sm:$0xff]   ;;  %v3222_v12 = vld [vmem:[#allocation8 + $0x204] ss:$16 sps:$4 sm:$0xff]   ;;  %v124_v14 = vcombine.high %v3857_v9, %v3857_v9 }
  0x71   :  { %913 = vmatprep.subr.bf16.mxu0 %v3159_v24  ;;  %995 = vmatprep.subr.bf16.mxu1 %v3161_v25  ;;  %v130_v60 = vpack.c.bf16 %v123_v58, %v123_v58  ;;  %v3225_v13 = vld [vmem:[#allocation8 + $0x20c] ss:$16 sps:$4 sm:$0xff]   ;;  %v3220_v15 = vld [vmem:[#allocation8 + $0x200] ss:$16 sps:$4 sm:$0xff]   ;;  %v3223_v17 = vld [vmem:[#allocation8 + $0x208] ss:$16 sps:$4 sm:$0xff]  }
  0x72   :  { %v3228_v18 = vld [vmem:[#allocation8 + $0x224] ss:$16 sps:$4 sm:$0xff]   ;;  %v3231_v19 = vld [vmem:[#allocation8 + $0x22c] ss:$16 sps:$4 sm:$0xff]   ;;  %v132_v20 = vpack.c.bf16 %v124_v14, %v124_v14  ;;  %v3226_v21 = vld [vmem:[#allocation8 + $0x220] ss:$16 sps:$4 sm:$0xff]  }
  0x73   :  { %933 = vmatprep.mubr.bf16.mxu0 %v130_v60  ;;  %1015 = vmatprep.mubr.bf16.mxu1 %v130_v60  ;;  %v3229_v22 = vld [vmem:[#allocation8 + $0x228] ss:$16 sps:$4 sm:$0xff]   ;;  %v3234_v23 = vld [vmem:[#allocation8 + $0x244] ss:$16 sps:$4 sm:$0xff]   ;;  %v3237_v24 = vld [vmem:[#allocation8 + $0x24c] ss:$16 sps:$4 sm:$0xff]  }
  0x74   :  { %914 = vmatpush1.bf16.msra.mxu0 %v3163_v26  ;;  %996 = vmatpush1.bf16.msra.mxu1 %v3164_v27  ;;  %v3232_v25 = vld [vmem:[#allocation8 + $0x240] ss:$16 sps:$4 sm:$0xff]   ;;  %v3235_v26 = vld [vmem:[#allocation8 + $0x248] ss:$16 sps:$4 sm:$0xff]   ;;  %v3240_v27 = vld [vmem:[#allocation8 + $0x264] ss:$16 sps:$4 sm:$0xff]  }
  0x75   :  { %915 = vmatprep.subr.bf16.mxu0 %v3165_v28  ;;  %997 = vmatprep.subr.bf16.mxu1 %v3167_v29  ;;  %v3243_v28 = vld [vmem:[#allocation8 + $0x26c] ss:$16 sps:$4 sm:$0xff]   ;;  %v3238_v29 = vld [vmem:[#allocation8 + $0x260] ss:$16 sps:$4 sm:$0xff]   ;;  %v3253_v38 = vld [vmem:[#allocation8 + $0x2a8] ss:$16 sps:$4 sm:$0xff]  }
  0x76   :  { %v3255_v36 = vld [vmem:[#allocation8 + $0x2ac] ss:$16 sps:$4 sm:$0xff]   ;;  %v3250_v37 = vld [vmem:[#allocation8 + $0x2a0] ss:$16 sps:$4 sm:$0xff]   ;;  %v3259_v42 = vld [vmem:[#allocation8 + $0x2c8] ss:$16 sps:$4 sm:$0xff]  }
  0x77   :  { %v3271_v52 = vld [vmem:[#allocation8 + $0x308] ss:$16 sps:$4 sm:$0xff]   ;;  %v3279_v54 = vld [vmem:[#allocation8 + $0x32c] ss:$16 sps:$4 sm:$0xff]   ;;  %v3312_v14 = vld [vmem:[#allocation8 + $0x3e4] ss:$16 sps:$4 sm:$0xff]  }
  0x78   :  { %916 = vmatpush1.bf16.msra.mxu0 %v3169_v30  ;;  %998 = vmatpush1.bf16.msra.mxu1 %v3170_v31  ;;  %v3241_v30 = vld [vmem:[#allocation8 + $0x268] ss:$16 sps:$4 sm:$0xff]   ;;  %v3246_v31 = vld [vmem:[#allocation8 + $0x284] ss:$16 sps:$4 sm:$0xff]   ;;  %v3285_v58 = vld [vmem:[#allocation8 + $0x34c] ss:$16 sps:$4 sm:$0xff]  }
  0x79   :  { %917 = vmatprep.subr.bf16.mxu0 %v3171_v32  ;;  %999 = vmatprep.subr.bf16.mxu1 %v3173_v33  ;;  %v3249_v32 = vld [vmem:[#allocation8 + $0x28c] ss:$16 sps:$4 sm:$0xff]   ;;  %v3244_v33 = vld [vmem:[#allocation8 + $0x280] ss:$16 sps:$4 sm:$0xff]   ;;  %v3283_v60 = vld [vmem:[#allocation8 + $0x348] ss:$16 sps:$4 sm:$0xff]  }
  0x7a   :  { %v3295_v4 = vld [vmem:[#allocation8 + $0x388] ss:$16 sps:$4 sm:$0xff]   ;;  %s2822_s12 = sshll.u32 %s3739_s2, 4  ;;  %s2823_s12 = int_to_ptr.vmem [resolvable:$true] %s2822_s12 }
  0x7b   :  { %s3699_s13 = scalar_lea.vmem %s2823_s12, 1024  ;;  %p3704_p13 = scmp.lt.s32.totalorder %s2823_s12, %s2823_s12 }
  0x7c   :  { %918 = vmatpush1.bf16.msra.mxu0 %v3175_v34  ;;  %1000 = vmatpush1.bf16.msra.mxu1 %v3176_v35  ;;  %v3247_v34 = vld [vmem:[#allocation8 + $0x288] ss:$16 sps:$4 sm:$0xff]   ;;  %v3252_v35 = vld [vmem:[#allocation8 + $0x2a4] ss:$16 sps:$4 sm:$0xff]   ;;  %p3700_p12 = scmp.ne.s32.totalorder %s2823_s12, %s3699_s13  ;;  %p3705_p0 = scmp.lt.s32.totalorder %s3699_s13, %s3699_s13 }
  0x7d   :  { %919 = vmatprep.subr.bf16.mxu0 %v3177_v39  ;;  %1001 = vmatprep.subr.bf16.mxu1 %v3179_v40  ;;  %v3258_v39 = vld [vmem:[#allocation8 + $0x2c4] ss:$16 sps:$4 sm:$0xff]   ;;  %v3261_v40 = vld [vmem:[#allocation8 + $0x2cc] ss:$16 sps:$4 sm:$0xff]  }
  0x7e   :  { %p3706_p1 = por %p3705_p0, %p3704_p13 }
  0x80   :  { %920 = vmatpush1.bf16.msra.mxu0 %v3181_v41  ;;  %1002 = vmatpush1.bf16.msra.mxu1 %v3182_v44  ;;  %v3256_v41 = vld [vmem:[#allocation8 + $0x2c0] ss:$16 sps:$4 sm:$0xff]   ;;  %v3264_v44 = vld [vmem:[#allocation8 + $0x2e4] ss:$16 sps:$4 sm:$0xff]   ;;  %p3707_p2 = pnand %p3706_p1, %p3700_p12 }
  0x81   :  { %921 = vmatprep.subr.bf16.mxu0 %v3183_v45  ;;  %1003 = vmatprep.subr.bf16.mxu1 %v3185_v46  ;;  %v3267_v45 = vld [vmem:[#allocation8 + $0x2ec] ss:$16 sps:$4 sm:$0xff]   ;;  %v3262_v46 = vld [vmem:[#allocation8 + $0x2e0] ss:$16 sps:$4 sm:$0xff]  }
  0x84   :  { %922 = vmatpush1.bf16.msra.mxu0 %v3187_v47  ;;  %1004 = vmatpush1.bf16.msra.mxu1 %v3188_v48  ;;  %v3265_v47 = vld [vmem:[#allocation8 + $0x2e8] ss:$16 sps:$4 sm:$0xff]   ;;  %v3270_v48 = vld [vmem:[#allocation8 + $0x304] ss:$16 sps:$4 sm:$0xff]  }
  0x85   :  { %923 = vmatprep.subr.bf16.mxu0 %v3189_v50  ;;  %1005 = vmatprep.subr.bf16.mxu1 %v3191_v51  ;;  %v3273_v50 = vld [vmem:[#allocation8 + $0x30c] ss:$16 sps:$4 sm:$0xff]   ;;  %v3268_v51 = vld [vmem:[#allocation8 + $0x300] ss:$16 sps:$4 sm:$0xff]  }
  0x88   :  { %924 = vmatpush1.bf16.msra.mxu0 %v3193_v53  ;;  %1006 = vmatpush1.bf16.msra.mxu1 %v3194_v55  ;;  %v3276_v53 = vld [vmem:[#allocation8 + $0x324] ss:$16 sps:$4 sm:$0xff]   ;;  %v3274_v55 = vld [vmem:[#allocation8 + $0x320] ss:$16 sps:$4 sm:$0xff]  }
  0x89   :  { %925 = vmatprep.subr.bf16.mxu0 %v3195_v56  ;;  %1007 = vmatprep.subr.bf16.mxu1 %v3197_v57  ;;  %v3277_v56 = vld [vmem:[#allocation8 + $0x328] ss:$16 sps:$4 sm:$0xff]   ;;  %v3282_v57 = vld [vmem:[#allocation8 + $0x344] ss:$16 sps:$4 sm:$0xff]  }
  0x8c   :  { %926 = vmatpush1.bf16.msra.mxu0 %v3199_v59  ;;  %1008 = vmatpush1.bf16.msra.mxu1 %v3200_v61  ;;  %v3280_v59 = vld [vmem:[#allocation8 + $0x340] ss:$16 sps:$4 sm:$0xff]   ;;  %v3288_v61 = vld [vmem:[#allocation8 + $0x364] ss:$16 sps:$4 sm:$0xff]  }
  0x8d   :  { %927 = vmatprep.subr.bf16.mxu0 %v3201_v62  ;;  %1009 = vmatprep.subr.bf16.mxu1 %v3203_v63  ;;  %v3291_v62 = vld [vmem:[#allocation8 + $0x36c] ss:$16 sps:$4 sm:$0xff]   ;;  %v3286_v63 = vld [vmem:[#allocation8 + $0x360] ss:$16 sps:$4 sm:$0xff]  }
  0x90   :  { %928 = vmatpush1.bf16.msra.mxu0 %v3205_v0  ;;  %1010 = vmatpush1.bf16.msra.mxu1 %v3206_v1  ;;  %v3289_v0 = vld [vmem:[#allocation8 + $0x368] ss:$16 sps:$4 sm:$0xff]   ;;  %v3294_v1 = vld [vmem:[#allocation8 + $0x384] ss:$16 sps:$4 sm:$0xff]  }
  0x91   :  { %929 = vmatprep.subr.bf16.mxu0 %v3207_v2  ;;  %1011 = vmatprep.subr.bf16.mxu1 %v3209_v3  ;;  %v3297_v2 = vld [vmem:[#allocation8 + $0x38c] ss:$16 sps:$4 sm:$0xff]   ;;  %v3292_v3 = vld [vmem:[#allocation8 + $0x380] ss:$16 sps:$4 sm:$0xff]  }
  0x94   :  { %930 = vmatpush1.bf16.msra.mxu0 %v3211_v5  ;;  %1012 = vmatpush1.bf16.msra.mxu1 %v3212_v6  ;;  %v3300_v5 = vld [vmem:[#allocation8 + $0x3a4] ss:$16 sps:$4 sm:$0xff]   ;;  %v3303_v6 = vld [vmem:[#allocation8 + $0x3ac] ss:$16 sps:$4 sm:$0xff]  }
  0x95   :  { %931 = vmatprep.subr.bf16.mxu0 %v3213_v7  ;;  %1013 = vmatprep.subr.bf16.mxu1 %v3215_v8  ;;  %v3298_v7 = vld [vmem:[#allocation8 + $0x3a0] ss:$16 sps:$4 sm:$0xff]   ;;  %v3301_v8 = vld [vmem:[#allocation8 + $0x3a8] ss:$16 sps:$4 sm:$0xff]  }
  0x98   :  { %932 = vmatpush1.bf16.msra.mxu0 %v3217_v10  ;;  %1014 = vmatpush1.bf16.msra.mxu1 %v3218_v11  ;;  %v3306_v10 = vld [vmem:[#allocation8 + $0x3c4] ss:$16 sps:$4 sm:$0xff]   ;;  %v3309_v11 = vld [vmem:[#allocation8 + $0x3cc] ss:$16 sps:$4 sm:$0xff]  }
  0x99   :  { %942 = vmatprep.subr.bf16.mxu0 %v3222_v12  ;;  %1024 = vmatprep.subr.bf16.mxu1 %v3225_v13  ;;  %v3304_v12 = vld [vmem:[#allocation8 + $0x3c0] ss:$16 sps:$4 sm:$0xff]   ;;  %v3307_v13 = vld [vmem:[#allocation8 + $0x3c8] ss:$16 sps:$4 sm:$0xff]  }
  0x9b   :  { %934 = vmatmul.mubr.bf16.vlgmr.msra.gmra.mrb[0].mxu0 %v129_v16  ;;  %1016 = vmatmul.mubr.bf16.vlgmr.msra.gmra.mrb[0].mxu1 %v129_v16  ;;  %v3310_v16 = vld [vmem:[#allocation8 + $0x3e0] ss:$16 sps:$4 sm:$0xff]  }
  0x9c   :  { %943 = vmatpush1.bf16.msra.mxu0 %v3220_v15  ;;  %1025 = vmatpush1.bf16.msra.mxu1 %v3223_v17  ;;  %v3315_v15 = vld [vmem:[#allocation8 + $0x3ec] ss:$16 sps:$4 sm:$0xff]   ;;  %v3313_v17 = vld [vmem:[#allocation8 + $0x3e8] ss:$16 sps:$4 sm:$0xff]  }
  0x9d   :  { %944 = vmatprep.subr.bf16.mxu0 %v3228_v18  ;;  %1026 = vmatprep.subr.bf16.mxu1 %v3231_v19  ;;  %v131_v18 = vpack.c.bf16 %v3857_v9, %v3857_v9 }
  0x9e   :  { %974 = vmatprep.mubr.bf16.mxu0 %v132_v20  ;;  %1056 = vmatprep.mubr.bf16.mxu1 %v132_v20 }
  0xa0   :  { %945 = vmatpush1.bf16.msra.mxu0 %v3226_v21  ;;  %1027 = vmatpush1.bf16.msra.mxu1 %v3229_v22  ;;  %v3865_v21 = vld [vmem:[#allocation6 + $0x10] sm:$0xff]  ;;  %v3867_v22 = vld [vmem:[#allocation6] sm:$0xff] }
  0xa1   :  { %946 = vmatprep.subr.bf16.mxu0 %v3234_v23  ;;  %1028 = vmatprep.subr.bf16.mxu1 %v3237_v24 }
  0xa4   :  { %947 = vmatpush1.bf16.msra.mxu0 %v3232_v25  ;;  %1029 = vmatpush1.bf16.msra.mxu1 %v3235_v26 }
  0xa5   :  { %948 = vmatprep.subr.bf16.mxu0 %v3240_v27  ;;  %1030 = vmatprep.subr.bf16.mxu1 %v3243_v28  ;;  %v3875_v28 = vld [vmem:[#allocation6 + $0x18] sm:$0xff] }
  0xa8   :  { %949 = vmatpush1.bf16.msra.mxu0 %v3238_v29  ;;  %1031 = vmatpush1.bf16.msra.mxu1 %v3241_v30  ;;  %v3877_v29 = vld [vmem:[#allocation6 + $0x8] sm:$0xff] }
  0xa9   :  { %950 = vmatprep.subr.bf16.mxu0 %v3246_v31  ;;  %1032 = vmatprep.subr.bf16.mxu1 %v3249_v32 }
  0xac   :  { %951 = vmatpush1.bf16.msra.mxu0 %v3244_v33  ;;  %1033 = vmatpush1.bf16.msra.mxu1 %v3247_v34 }
  0xad   :  { %952 = vmatprep.subr.bf16.mxu0 %v3252_v35  ;;  %1034 = vmatprep.subr.bf16.mxu1 %v3255_v36  ;;  %v3883_v36 = vld [vmem:[#allocation6 + $0x28] sm:$0xff] }
  0xb0   :  { %953 = vmatpush1.bf16.msra.mxu0 %v3250_v37  ;;  %1035 = vmatpush1.bf16.msra.mxu1 %v3253_v38  ;;  %v3885_v37 = vld [vmem:[#allocation6 + $0x20] sm:$0xff] }
  0xb1   :  { %954 = vmatprep.subr.bf16.mxu0 %v3258_v39  ;;  %1036 = vmatprep.subr.bf16.mxu1 %v3261_v40 }
  0xb4   :  { %955 = vmatpush1.bf16.msra.mxu0 %v3256_v41  ;;  %1037 = vmatpush1.bf16.msra.mxu1 %v3259_v42  ;;  %v3891_v42 = vld [vmem:[#allocation6 + $0x38] sm:$0xff] }
  0xb5   :  { %956 = vmatprep.subr.bf16.mxu0 %v3264_v44  ;;  %1038 = vmatprep.subr.bf16.mxu1 %v3267_v45  ;;  %v3893_v44 = vld [vmem:[#allocation6 + $0x30] sm:$0xff]  ;;  %v1425_v45 = vrot.slane %v3877_v29, 4 }
  0xb8   :  { %957 = vmatpush1.bf16.msra.mxu0 %v3262_v46  ;;  %1039 = vmatpush1.bf16.msra.mxu1 %v3265_v47  ;;  %v1424_v46 = vrot.slane %v3867_v22, 4 }
  0xb9   :  { %958 = vmatprep.subr.bf16.mxu0 %v3270_v48  ;;  %1040 = vmatprep.subr.bf16.mxu1 %v3273_v50 }
  0xbc   :  { %959 = vmatpush1.bf16.msra.mxu0 %v3268_v51  ;;  %1041 = vmatpush1.bf16.msra.mxu1 %v3271_v52  ;;  %v1427_v52 = vrot.slane %v3875_v28, 4 }
  0xbd   :  { %960 = vmatprep.subr.bf16.mxu0 %v3276_v53  ;;  %1042 = vmatprep.subr.bf16.mxu1 %v3279_v54  ;;  %v1426_v53 = vrot.slane %v3865_v21, 4 }
  0xc0   :  { %961 = vmatpush1.bf16.msra.mxu0 %v3274_v55  ;;  %1043 = vmatpush1.bf16.msra.mxu1 %v3277_v56 }
  0xc1   :  { %962 = vmatprep.subr.bf16.mxu0 %v3282_v57  ;;  %1044 = vmatprep.subr.bf16.mxu1 %v3285_v58  ;;  %v1429_v58 = vrot.slane %v3883_v36, 4 }
  0xc4   :  { %963 = vmatpush1.bf16.msra.mxu0 %v3280_v59  ;;  %1045 = vmatpush1.bf16.msra.mxu1 %v3283_v60  ;;  %v1428_v59 = vrot.slane %v3885_v37, 4 }
  0xc5   :  { %964 = vmatprep.subr.bf16.mxu0 %v3288_v61  ;;  %1046 = vmatprep.subr.bf16.mxu1 %v3291_v62 }
  0xc8   :  { %965 = vmatpush1.bf16.msra.mxu0 %v3286_v63  ;;  %1047 = vmatpush1.bf16.msra.mxu1 %v3289_v0  ;;  %v1431_v0 = vrot.slane %v3891_v42, 4 }
  0xc9   :  { %966 = vmatprep.subr.bf16.mxu0 %v3294_v1  ;;  %1048 = vmatprep.subr.bf16.mxu1 %v3297_v2  ;;  %v1430_v1 = vrot.slane %v3893_v44, 4 }
  0xcc   :  { %967 = vmatpush1.bf16.msra.mxu0 %v3292_v3  ;;  %1049 = vmatpush1.bf16.msra.mxu1 %v3295_v4 }
  0xcd   :  { %968 = vmatprep.subr.bf16.mxu0 %v3300_v5  ;;  %1050 = vmatprep.subr.bf16.mxu1 %v3303_v6  ;;  %v1202_v6 = vrot.slane %v3877_v29, 2 }
  0xd0   :  { %969 = vmatpush1.bf16.msra.mxu0 %v3298_v7  ;;  %1051 = vmatpush1.bf16.msra.mxu1 %v3301_v8  ;;  %v1201_v7 = vrot.slane %v3867_v22, 2 }
  0xd1   :  { %970 = vmatprep.subr.bf16.mxu0 %v3306_v10  ;;  %1052 = vmatprep.subr.bf16.mxu1 %v3309_v11 }
  0xd4   :  { %971 = vmatpush1.bf16.msra.mxu0 %v3304_v12  ;;  %1053 = vmatpush1.bf16.msra.mxu1 %v3307_v13  ;;  %v1204_v13 = vrot.slane %v3875_v28, 2 }
  0xd5   :  { %972 = vmatprep.subr.bf16.mxu0 %v3312_v14  ;;  %1054 = vmatprep.subr.bf16.mxu1 %v3315_v15  ;;  %v1203_v14 = vrot.slane %v3865_v21, 2 }
  0xd8   :  { %973 = vmatpush1.bf16.msra.mxu0 %v3310_v16  ;;  %1055 = vmatpush1.bf16.msra.mxu1 %v3313_v17 }
  0xdb   :  { %975 = vmatmul.mubr.bf16.vlgmr.msra.gmra.mrb[0].mxu0 %v131_v18  ;;  %1057 = vmatmul.mubr.bf16.vlgmr.msra.gmra.mrb[0].mxu1 %v131_v18 }
 0x1ae   :  { %v976_v19 = vpop.f32.mrb[0].mxu0  ;;  %v3863_v20 = vpop.f32.mrb[0].mxu1 }
 0x1af   :  { %v3869_v23 = vpop.f32.mrb[1].mxu0  ;;  %v3871_v24 = vpop.f32.mrb[1].mxu1  ;;  %v1067_v25 = vmul.f32 %v976_v19, %v3865_v21  ;;  %v1065_v9 = vmul.f32 %v976_v19, %v3867_v22  ;;  %v1068_v34 = vmul.f32 %v976_v19, %v3875_v28  ;;  %v1066_v35 = vmul.f32 %v976_v19, %v3877_v29 }
 0x1b0   :  { %v980_v26 = vpop.f32.mrb[2].mxu0  ;;  %v1062_v27 = vpop.f32.mrb[2].mxu1  ;;  %v1070_v40 = vmul.f32 %v976_v19, %v3883_v36  ;;  %v1069_v41 = vmul.f32 %v976_v19, %v3885_v37  ;;  %v1072_v50 = vmul.f32 %v976_v19, %v3891_v42  ;;  %v1071_v51 = vmul.f32 %v976_v19, %v3893_v44 }
 0x1b1   :  { %v981_v30 = vpop.f32.mrb[3].mxu0  ;;  %v1063_v31 = vpop.f32.mrb[3].mxu1  ;;  %v1080_v32 = vsel %vm1073_vm0, %v1067_v25, 0.0  ;;  %v1074_v33 = vsel %vm1073_vm0, %v1065_v9, 0.0  ;;  %v1083_v38 = vsel %vm1073_vm0, %v1068_v34, 0.0  ;;  %v1077_v39 = vsel %vm1073_vm0, %v1066_v35, 0.0 }
 0x1b2   :  { %1081 = vadd.xlane.f32.xlu1 %v1080_v32  ;;  %1075 = vadd.xlane.f32.xlu0 %v1074_v33  ;;  %v1089_v47 = vsel %vm1073_vm0, %v1070_v40, 0.0  ;;  %v1086_v48 = vsel %vm1073_vm0, %v1069_v41, 0.0  ;;  %v1095_v54 = vsel %vm1073_vm0, %v1072_v50, 0.0  ;;  %v1092_v55 = vsel %vm1073_vm0, %v1071_v51, 0.0 }
 0x1b3   :  { %v1441_v56 = vmul.f32 %v1425_v45, %v3863_v20  ;;  %v1440_v57 = vmul.f32 %v1424_v46, %v3863_v20  ;;  %v1443_v62 = vmul.f32 %v1427_v52, %v3863_v20  ;;  %v1442_v63 = vmul.f32 %v1426_v53, %v3863_v20 }
 0x1b4   :  { %v1445_v4 = vmul.f32 %v1429_v58, %v3863_v20  ;;  %v1444_v5 = vmul.f32 %v1428_v59, %v3863_v20  ;;  %v1447_v11 = vmul.f32 %v1431_v0, %v3863_v20  ;;  %v1446_v12 = vmul.f32 %v1430_v1, %v3863_v20  ;;  %v3329_v0 = vld [vmem:[#allocation9 + $0xc] ss:$16 sps:$4 sm:$0xff]   ;;  %v3324_v1 = vld [vmem:[#allocation9] ss:$16 sps:$4 sm:$0xff]  }
 0x1b5   :  { %v1451_v60 = vsel %vm1073_vm0, %v1441_v56, 0.0  ;;  %v1448_v61 = vsel %vm1073_vm0, %v1440_v57, 0.0  ;;  %v1457_v2 = vsel %vm1073_vm0, %v1443_v62, 0.0  ;;  %v1454_v3 = vsel %vm1073_vm0, %v1442_v63, 0.0  ;;  %v3326_v63 = vld [vmem:[#allocation9 + $0x4] ss:$16 sps:$4 sm:$0xff]   ;;  %2697 = vmatprep.subr.bf16.mxu1 %v3329_v0 }
 0x1b6   :  { %1084 = vadd.xlane.f32.xlu1 %v1083_v38  ;;  %1078 = vadd.xlane.f32.xlu0 %v1077_v39  ;;  %v1463_v8 = vsel %vm1073_vm0, %v1445_v4, 0.0  ;;  %v1460_v10 = vsel %vm1073_vm0, %v1444_v5, 0.0  ;;  %v1469_v15 = vsel %vm1073_vm0, %v1447_v11, 0.0  ;;  %v1466_v16 = vsel %vm1073_vm0, %v1446_v12, 0.0  ;;  %v3335_v4 = vld [vmem:[#allocation9 + $0x2c] ss:$16 sps:$4 sm:$0xff]  }
 0x1b7   :  { %v1218_v17 = vmul.f32 %v1202_v6, %v3869_v23  ;;  %v1217_v18 = vmul.f32 %v1201_v7, %v3869_v23  ;;  %v1206_v19 = vrot.slane %v3883_v36, 2  ;;  %v1205_v20 = vrot.slane %v3885_v37, 2  ;;  %2615 = vmatprep.subr.bf16.mxu0 %v3326_v63  ;;  %v3330_v5 = vld [vmem:[#allocation9 + $0x20] ss:$16 sps:$4 sm:$0xff]   ;;  %v3338_v6 = vld [vmem:[#allocation9 + $0x44] ss:$16 sps:$4 sm:$0xff]  }
 0x1b8   :  { %v1220_v26 = vmul.f32 %v1204_v13, %v3869_v23  ;;  %v1219_v27 = vmul.f32 %v1203_v14, %v3869_v23  ;;  %v1208_v30 = vrot.slane %v3891_v42, 2  ;;  %v1207_v31 = vrot.slane %v3893_v44, 2  ;;  %2616 = vmatpush1.bf16.msra.mxu0 %v3324_v1  ;;  %v3341_v7 = vld [vmem:[#allocation9 + $0x4c] ss:$16 sps:$4 sm:$0xff]   ;;  %v3344_v11 = vld [vmem:[#allocation9 + $0x64] ss:$16 sps:$4 sm:$0xff]  }
 0x1b9   :  { %v1228_v25 = vsel %vm1073_vm0, %v1218_v17, 0.0  ;;  %v1225_v9 = vsel %vm1073_vm0, %v1217_v18, 0.0  ;;  %v1222_v34 = vmul.f32 %v1206_v19, %v3869_v23  ;;  %v1221_v35 = vmul.f32 %v1205_v20, %v3869_v23  ;;  %v3347_v12 = vld [vmem:[#allocation9 + $0x6c] ss:$16 sps:$4 sm:$0xff]   ;;  %v3342_v13 = vld [vmem:[#allocation9 + $0x60] ss:$16 sps:$4 sm:$0xff]  }
 0x1ba   :  { %1090 = vadd.xlane.f32.xlu1 %v1089_v47  ;;  %1087 = vadd.xlane.f32.xlu0 %v1086_v48  ;;  %v1234_v32 = vsel %vm1073_vm0, %v1220_v26, 0.0  ;;  %v1231_v33 = vsel %vm1073_vm0, %v1219_v27, 0.0  ;;  %v1640_v38 = vrot.slane %v3877_v29, 6  ;;  %v1639_v39 = vrot.slane %v3867_v22, 6  ;;  %v3345_v14 = vld [vmem:[#allocation9 + $0x68] ss:$16 sps:$4 sm:$0xff]  }
 0x1bb   :  { %v1240_v40 = vsel %vm1073_vm0, %v1222_v34, 0.0  ;;  %v1237_v41 = vsel %vm1073_vm0, %v1221_v35, 0.0  ;;  %v1224_v45 = vmul.f32 %v1208_v30, %v3869_v23  ;;  %v1223_v46 = vmul.f32 %v1207_v31, %v3869_v23  ;;  %v3348_v17 = vld [vmem:[#allocation9 + $0x80] ss:$16 sps:$4 sm:$0xff]   ;;  %v3351_v18 = vld [vmem:[#allocation9 + $0x88] ss:$16 sps:$4 sm:$0xff]  }
 0x1bc   :  { %v1642_v47 = vrot.slane %v3875_v28, 6  ;;  %v1641_v48 = vrot.slane %v3865_v21, 6  ;;  %v1656_v22 = vmul.f32 %v1640_v38, %v3871_v24  ;;  %v1655_v51 = vmul.f32 %v1639_v39, %v3871_v24  ;;  %v3357_v26 = vld [vmem:[#allocation9 + $0xa8] ss:$16 sps:$4 sm:$0xff]   ;;  %v3359_v27 = vld [vmem:[#allocation9 + $0xac] ss:$16 sps:$4 sm:$0xff]  }
 0x1bd   :  { %v1246_v50 = vsel %vm1073_vm0, %v1224_v45, 0.0  ;;  %v1243_v29 = vsel %vm1073_vm0, %v1223_v46, 0.0  ;;  %v1644_v52 = vrot.slane %v3883_v36, 6  ;;  %v1643_v23 = vrot.slane %v3885_v37, 6  ;;  %v3363_v34 = vld [vmem:[#allocation9 + $0xc8] ss:$16 sps:$4 sm:$0xff]  }
 0x1be   :  { %1096 = vadd.xlane.f32.xlu1 %v1095_v54  ;;  %1093 = vadd.xlane.f32.xlu0 %v1092_v55  ;;  %v1666_v53 = vsel %vm1073_vm0, %v1656_v22, 0.0  ;;  %v1663_v28 = vsel %vm1073_vm0, %v1655_v51, 0.0  ;;  %v1658_v21 = vmul.f32 %v1642_v47, %v3871_v24  ;;  %v1657_v54 = vmul.f32 %v1641_v48, %v3871_v24  ;;  %v3365_v35 = vld [vmem:[#allocation9 + $0xcc] ss:$16 sps:$4 sm:$0xff]   ;;  %v3368_v47 = vld [vmem:[#allocation9 + $0xe4] ss:$16 sps:$4 sm:$0xff]  }
 0x1bf   :  { %v1646_v55 = vrot.slane %v3891_v42, 6  ;;  %v1645_v56 = vrot.slane %v3893_v44, 6  ;;  %v1660_v37 = vmul.f32 %v1644_v52, %v3871_v24  ;;  %v1659_v58 = vmul.f32 %v1643_v23, %v3871_v24  ;;  %v3366_v48 = vld [vmem:[#allocation9 + $0xe0] ss:$16 sps:$4 sm:$0xff]  }
 0x1c0   :  { %v1672_v57 = vsel %vm1073_vm0, %v1658_v21, 0.0  ;;  %v1669_v36 = vsel %vm1073_vm0, %v1657_v54, 0.0 }
 0x1c1   :  { %v1678_v59 = vsel %vm1073_vm0, %v1660_v37, 0.0  ;;  %v1661_v42 = vmul.f32 %v1645_v56, %v3871_v24 }
 0x1c2   :  { %1452 = vadd.xlane.f32.xlu1 %v1451_v60  ;;  %1449 = vadd.xlane.f32.xlu0 %v1448_v61  ;;  %v1675_v60 = vsel %vm1073_vm0, %v1659_v58, 0.0  ;;  %v1662_v61 = vmul.f32 %v1646_v55, %v3871_v24  ;;  %v3333_v24 = vld [vmem:[#allocation9 + $0x28] ss:$16 sps:$4 sm:$0xff]   ;;  %v3372_v58 = vld [vmem:[#allocation9 + $0x100] ss:$16 sps:$4 sm:$0xff]  }
 0x1c3   :  { %v1681_v62 = vsel %vm1073_vm0, %v1661_v42, 0.0 }
 0x1c4   :  { %v1684_v44 = vsel %vm1073_vm0, %v1662_v61, 0.0 }
 0x1c6   :  { %1458 = vadd.xlane.f32.xlu1 %v1457_v2  ;;  %1455 = vadd.xlane.f32.xlu0 %v1454_v3  ;;  %v3327_v2 = vld [vmem:[#allocation9 + $0x8] ss:$16 sps:$4 sm:$0xff]   ;;  %v3332_v3 = vld [vmem:[#allocation9 + $0x24] ss:$16 sps:$4 sm:$0xff]  }
 0x1c7   :  { %2698 = vmatpush1.bf16.msra.mxu1 %v3327_v2  ;;  %2617 = vmatprep.subr.bf16.mxu0 %v3332_v3 }
 0x1c8   :  { %2699 = vmatprep.subr.bf16.mxu1 %v3335_v4  ;;  %2618 = vmatpush1.bf16.msra.mxu0 %v3330_v5  ;;  %v3380_v4 = vld [vmem:[#allocation9 + $0x124] ss:$16 sps:$4 sm:$0xff]  }
 0x1c9   :  { %2619 = vmatprep.subr.bf16.mxu0 %v3338_v6  ;;  %v3378_v6 = vld [vmem:[#allocation9 + $0x120] ss:$16 sps:$4 sm:$0xff]  }
 0x1ca   :  { %1464 = vadd.xlane.f32.xlu1 %v1463_v8  ;;  %1461 = vadd.xlane.f32.xlu0 %v1460_v10  ;;  %v3336_v8 = vld [vmem:[#allocation9 + $0x40] ss:$16 sps:$4 sm:$0xff]   ;;  %v3339_v10 = vld [vmem:[#allocation9 + $0x48] ss:$16 sps:$4 sm:$0xff]  }
 0x1cb   :  { %2700 = vmatpush1.bf16.msra.mxu1 %v3333_v24 }
 0x1cc   :  { %2701 = vmatprep.subr.bf16.mxu1 %v3341_v7  ;;  %2620 = vmatpush1.bf16.msra.mxu0 %v3336_v8  ;;  %v3381_v7 = vld [vmem:[#allocation9 + $0x128] ss:$16 sps:$4 sm:$0xff]   ;;  %v3383_v8 = vld [vmem:[#allocation9 + $0x12c] ss:$16 sps:$4 sm:$0xff]  }
 0x1cd   :  { %2621 = vmatprep.subr.bf16.mxu0 %v3344_v11 }
 0x1ce   :  { %1470 = vadd.xlane.f32.xlu1 %v1469_v15  ;;  %1467 = vadd.xlane.f32.xlu0 %v1466_v16  ;;  %v3350_v15 = vld [vmem:[#allocation9 + $0x84] ss:$16 sps:$4 sm:$0xff]   ;;  %v3353_v16 = vld [vmem:[#allocation9 + $0x8c] ss:$16 sps:$4 sm:$0xff]  }
 0x1cf   :  { %2702 = vmatpush1.bf16.msra.mxu1 %v3339_v10 }
 0x1d0   :  { %2703 = vmatprep.subr.bf16.mxu1 %v3347_v12  ;;  %2622 = vmatpush1.bf16.msra.mxu0 %v3342_v13 }
 0x1d1   :  { %2623 = vmatprep.subr.bf16.mxu0 %v3350_v15  ;;  %v3386_v15 = vld [vmem:[#allocation9 + $0x144] ss:$16 sps:$4 sm:$0xff]  }
 0x1d2   :  { %1229 = vadd.xlane.f32.xlu1 %v1228_v25  ;;  %1226 = vadd.xlane.f32.xlu0 %v1225_v9  ;;  %v3356_v25 = vld [vmem:[#allocation9 + $0xa4] ss:$16 sps:$4 sm:$0xff]   ;;  %v3354_v9 = vld [vmem:[#allocation9 + $0xa0] ss:$16 sps:$4 sm:$0xff]  }
 0x1d3   :  { %2704 = vmatpush1.bf16.msra.mxu1 %v3345_v14 }
 0x1d4   :  { %2705 = vmatprep.subr.bf16.mxu1 %v3353_v16  ;;  %2624 = vmatpush1.bf16.msra.mxu0 %v3348_v17 }
 0x1d5   :  { %2625 = vmatprep.subr.bf16.mxu0 %v3356_v25  ;;  %v3387_v25 = vld [vmem:[#allocation9 + $0x148] ss:$16 sps:$4 sm:$0xff]  }
 0x1d6   :  { %1235 = vadd.xlane.f32.xlu1 %v1234_v32  ;;  %1232 = vadd.xlane.f32.xlu0 %v1231_v33  ;;  %v3362_v32 = vld [vmem:[#allocation9 + $0xc4] ss:$16 sps:$4 sm:$0xff]   ;;  %v3360_v33 = vld [vmem:[#allocation9 + $0xc0] ss:$16 sps:$4 sm:$0xff]  }
 0x1d7   :  { %2706 = vmatpush1.bf16.msra.mxu1 %v3351_v18 }
 0x1d8   :  { %2707 = vmatprep.subr.bf16.mxu1 %v3359_v27  ;;  %2626 = vmatpush1.bf16.msra.mxu0 %v3354_v9  ;;  %v3389_v9 = vld [vmem:[#allocation9 + $0x14c] ss:$16 sps:$4 sm:$0xff]  }
 0x1d9   :  { %2627 = vmatprep.subr.bf16.mxu0 %v3362_v32 }
 0x1da   :  { %1241 = vadd.xlane.f32.xlu1 %v1240_v40  ;;  %1238 = vadd.xlane.f32.xlu0 %v1237_v41 }
 0x1db   :  { %2708 = vmatpush1.bf16.msra.mxu1 %v3357_v26 }
 0x1dc   :  { %2709 = vmatprep.subr.bf16.mxu1 %v3365_v35  ;;  %2628 = vmatpush1.bf16.msra.mxu0 %v3360_v33 }
 0x1dd   :  { %2629 = vmatprep.subr.bf16.mxu0 %v3368_v47 }
 0x1de   :  { %1247 = vadd.xlane.f32.xlu1 %v1246_v50  ;;  %1244 = vadd.xlane.f32.xlu0 %v1243_v29  ;;  %v3369_v50 = vld [vmem:[#allocation9 + $0xe8] ss:$16 sps:$4 sm:$0xff]   ;;  %v3371_v29 = vld [vmem:[#allocation9 + $0xec] ss:$16 sps:$4 sm:$0xff]  }
 0x1df   :  { %2710 = vmatpush1.bf16.msra.mxu1 %v3363_v34 }
 0x1e0   :  { %2711 = vmatprep.subr.bf16.mxu1 %v3371_v29  ;;  %2630 = vmatpush1.bf16.msra.mxu0 %v3366_v48 }
 0x1e2   :  { %1667 = vadd.xlane.f32.xlu1 %v1666_v53  ;;  %1664 = vadd.xlane.f32.xlu0 %v1663_v28 }
 0x1e3   :  { %2712 = vmatpush1.bf16.msra.mxu1 %v3369_v50 }
 0x1e6   :  { %1673 = vadd.xlane.f32.xlu1 %v1672_v57  ;;  %1670 = vadd.xlane.f32.xlu0 %v1669_v36  ;;  %v3374_v57 = vld [vmem:[#allocation9 + $0x104] ss:$16 sps:$4 sm:$0xff]  }
 0x1e7   :  { %2631 = vmatprep.subr.bf16.mxu0 %v3374_v57 }
 0x1e8   :  { %2632 = vmatpush1.bf16.msra.mxu0 %v3372_v58 }
 0x1e9   :  { %2633 = vmatprep.subr.bf16.mxu0 %v3380_v4  ;;  %v3404_v4 = vld [vmem:[#allocation9 + $0x1a4] ss:$16 sps:$4 sm:$0xff]  }
 0x1ea   :  { %1679 = vadd.xlane.f32.xlu1 %v1678_v59  ;;  %1676 = vadd.xlane.f32.xlu0 %v1675_v60  ;;  %v3375_v59 = vld [vmem:[#allocation9 + $0x108] ss:$16 sps:$4 sm:$0xff]   ;;  %v3377_v60 = vld [vmem:[#allocation9 + $0x10c] ss:$16 sps:$4 sm:$0xff]  }
 0x1eb   :  { %2713 = vmatprep.subr.bf16.mxu1 %v3377_v60 }
 0x1ec   :  { %2714 = vmatpush1.bf16.msra.mxu1 %v3375_v59  ;;  %2634 = vmatpush1.bf16.msra.mxu0 %v3378_v6 }
 0x1ed   :  { %2715 = vmatprep.subr.bf16.mxu1 %v3383_v8  ;;  %2635 = vmatprep.subr.bf16.mxu0 %v3386_v15 }
 0x1ee   :  { %1685 = vadd.xlane.f32.xlu1 %v1684_v44  ;;  %1682 = vadd.xlane.f32.xlu0 %v1681_v62 }
 0x1f0   :  { %2716 = vmatpush1.bf16.msra.mxu1 %v3381_v7  ;;  %v3407_v7 = vld [vmem:[#allocation9 + $0x1ac] ss:$16 sps:$4 sm:$0xff]  }
 0x1f1   :  { %2717 = vmatprep.subr.bf16.mxu1 %v3389_v9 }
 0x1f4   :  { %2718 = vmatpush1.bf16.msra.mxu1 %v3387_v25  ;;  %v3413_v25 = vld [vmem:[#allocation9 + $0x1cc] ss:$16 sps:$4 sm:$0xff]  }
 0x23f   :  { %v1082_v19 = vpop.xlane.xlu1 %1081  ;;  %v1076_v20 = vpop.xlane.xlu0 %1075 }
 0x240   :  { %v3973_v38 = vmul.f32 0.044194173, %v1076_v20  ;;  %v3981_v22 = vmul.f32 0.044194173, %v1082_v19  ;;  %v3384_v20 = vld [vmem:[#allocation9 + $0x140] ss:$16 sps:$4 sm:$0xff]  }
 0x241   :  { %2636 = vmatpush1.bf16.msra.mxu0 %v3384_v20 }
 0x242   :  { %v1106_v53 = vsel %vm1073_vm0, %v3973_v38, -inf  ;;  %v1108_v61 = vsel %vm1073_vm0, %v3981_v22, -inf }
 0x243   :  { %v1085_v30 = vpop.xlane.xlu1 %1084  ;;  %v1079_v31 = vpop.xlane.xlu0 %1078 }
 0x244   :  { %v3975_v39 = vmul.f32 0.044194173, %v1079_v31  ;;  %v3983_v51 = vmul.f32 0.044194173, %v1085_v30 }
 0x246   :  { %v1107_v28 = vsel %vm1073_vm0, %v3975_v39, -inf  ;;  %v1109_v42 = vsel %vm1073_vm0, %v3983_v51, -inf }
 0x247   :  { %v1091_v40 = vpop.xlane.xlu1 %1090  ;;  %v1088_v41 = vpop.xlane.xlu0 %1087 }
 0x248   :  { %v3977_v45 = vmul.f32 0.044194173, %v1091_v40  ;;  %v3979_v46 = vmul.f32 0.044194173, %v1088_v41 }
 0x24a   :  { %v1112_v52 = vsel %vm1073_vm0, %v3977_v45, -inf  ;;  %v1110_v23 = vsel %vm1073_vm0, %v3979_v46, -inf }
 0x24b   :  { %v1097_v21 = vpop.xlane.xlu1 %1096  ;;  %v1094_v54 = vpop.xlane.xlu0 %1093  ;;  %v1113_v36 = vmax.f32 %v1107_v28, %v1112_v52  ;;  %v1111_v37 = vmax.f32 %v1106_v53, %v1110_v23  ;;  %v3390_v52 = vld [vmem:[#allocation9 + $0x160] ss:$16 sps:$4 sm:$0xff]   ;;  %v3392_v23 = vld [vmem:[#allocation9 + $0x164] ss:$16 sps:$4 sm:$0xff]   ;;  %v3393_v53 = vld [vmem:[#allocation9 + $0x168] ss:$16 sps:$4 sm:$0xff]  }
 0x24c   :  { %v3993_v55 = vmul.f32 0.044194173, %v1097_v21  ;;  %v3995_v56 = vmul.f32 0.044194173, %v1094_v54  ;;  %2637 = vmatprep.subr.bf16.mxu0 %v3392_v23 }
 0x24d   :  { %v1118_v5 = vmax.f32 %v1111_v37, %v1113_v36  ;;  %v3398_v37 = vld [vmem:[#allocation9 + $0x184] ss:$16 sps:$4 sm:$0xff]   ;;  %2638 = vmatpush1.bf16.msra.mxu0 %v3390_v52 }
 0x24e   :  { %v1116_v44 = vsel %vm1073_vm0, %v3993_v55, -inf  ;;  %v1114_v62 = vsel %vm1073_vm0, %v3995_v56, -inf  ;;  %2639 = vmatprep.subr.bf16.mxu0 %v3398_v37 }
 0x24f   :  { %v1117_v63 = vmax.f32 %v1109_v42, %v1116_v44  ;;  %v1115_v0 = vmax.f32 %v1108_v61, %v1114_v62  ;;  %v1453_v1 = vpop.xlane.xlu1 %1452  ;;  %v1450_v2 = vpop.xlane.xlu0 %1449  ;;  %v3396_v61 = vld [vmem:[#allocation9 + $0x180] ss:$16 sps:$4 sm:$0xff]   ;;  %v3401_v42 = vld [vmem:[#allocation9 + $0x18c] ss:$16 sps:$4 sm:$0xff]  }
 0x250   :  { %v4005_v3 = vmul.f32 0.044194173, %v1453_v1  ;;  %v4011_v14 = vmul.f32 0.044194173, %v1450_v2  ;;  %v3399_v2 = vld [vmem:[#allocation9 + $0x188] ss:$16 sps:$4 sm:$0xff]  }
 0x251   :  { %v1119_v24 = vmax.f32 %v1115_v0, %v1117_v63  ;;  %2640 = vmatpush1.bf16.msra.mxu0 %v3396_v61 }
 0x252   :  { %v4009_v13 = vsel %vm1073_vm0, %v4005_v3, -inf  ;;  %2641 = vmatprep.subr.bf16.mxu0 %v3404_v4 }
 0x253   :  { %v1120_v10 = vmax.f32 %v1118_v5, %v1119_v24  ;;  %v1459_v11 = vpop.xlane.xlu1 %1458  ;;  %v1456_v12 = vpop.xlane.xlu0 %1455 }
 0x254   :  { %v4021_v40 = vmul.f32 0.044194173, %v1459_v11  ;;  %v4023_v41 = vmul.f32 0.044194173, %v1456_v12  ;;  %v3402_v11 = vld [vmem:[#allocation9 + $0x1a0] ss:$16 sps:$4 sm:$0xff]  }
 0x255   :  { %v1121_v16 = vsub.f32 %v3973_v38, %v1120_v10  ;;  %v1122_v17 = vsub.f32 %v3975_v39, %v1120_v10  ;;  %v1123_v18 = vsub.f32 %v3981_v22, %v1120_v10  ;;  %v1124_v19 = vsub.f32 %v3983_v51, %v1120_v10  ;;  %2642 = vmatpush1.bf16.msra.mxu0 %v3402_v11 }
 0x256   :  { %v1125_v26 = vsub.f32 %v3979_v46, %v1120_v10  ;;  %v1126_v27 = vsub.f32 %v3977_v45, %v1120_v10  ;;  %v1127_v30 = vsub.f32 %v3995_v56, %v1120_v10  ;;  %v1128_v31 = vsub.f32 %v3993_v55, %v1120_v10  ;;  %v3395_v55 = vld [vmem:[#allocation9 + $0x16c] ss:$16 sps:$4 sm:$0xff]  }
 0x257   :  { %v1129_v32 = vmul.f32 1.442695, %v1121_v16  ;;  %v1131_v33 = vmul.f32 1.442695, %v1122_v17  ;;  %v1133_v34 = vmul.f32 1.442695, %v1123_v18  ;;  %v1465_v35 = vpop.xlane.xlu1 %1464  ;;  %v1462_v38 = vpop.xlane.xlu0 %1461  ;;  %2719 = vmatprep.subr.bf16.mxu1 %v3395_v55 }
 0x258   :  { %v1135_v39 = vmul.f32 1.442695, %v1124_v19  ;;  %v1137_v46 = vmul.f32 1.442695, %v1125_v26  ;;  %v1139_v45 = vmul.f32 1.442695, %v1126_v27  ;;  %2720 = vmatpush1.bf16.msra.mxu1 %v3393_v53 }
 0x259   :  { %3517 = vpow2.f32 %v1129_v32  ;;  %v1141_v47 = vmul.f32 1.442695, %v1127_v30  ;;  %v1143_v48 = vmul.f32 1.442695, %v1128_v31  ;;  %v4025_v50 = vmul.f32 0.044194173, %v1465_v35  ;;  %2721 = vmatprep.subr.bf16.mxu1 %v3401_v42 }
 0x25a   :  { %3519 = vpow2.f32 %v1131_v33  ;;  %v4027_v29 = vmul.f32 0.044194173, %v1462_v38  ;;  %v1480_v56 = vsel %vm1073_vm0, %v4011_v14, -inf  ;;  %v1483_v57 = vsel %vm1073_vm0, %v4021_v40, -inf  ;;  %v3405_v16 = vld [vmem:[#allocation9 + $0x1a8] ss:$16 sps:$4 sm:$0xff]  }
 0x25b   :  { %3521 = vpow2.f32 %v1133_v34  ;;  %v1471_v22 = vpop.xlane.xlu1 %1470  ;;  %v1468_v51 = vpop.xlane.xlu0 %1467  ;;  %v1486_v28 = vsel %vm1073_vm0, %v4025_v50, -inf  ;;  %v1482_v44 = vsel %vm1073_vm0, %v4023_v41, -inf  ;;  %v3410_v17 = vld [vmem:[#allocation9 + $0x1c4] ss:$16 sps:$4 sm:$0xff]   ;;  %v3419_v55 = vld [vmem:[#allocation9 + $0x1ec] ss:$16 sps:$4 sm:$0xff]  }
 0x25c   :  { %3523 = vpow2.f32 %v1135_v39  ;;  %v1484_v21 = vsel %vm1073_vm0, %v4027_v29, -inf  ;;  %v4033_v54 = vmul.f32 0.044194173, %v1471_v22  ;;  %v4039_v36 = vmul.f32 0.044194173, %v1468_v51  ;;  %2722 = vmatpush1.bf16.msra.mxu1 %v3399_v2  ;;  %2643 = vmatprep.subr.bf16.mxu0 %v3410_v17 }
 0x25d   :  { %3525 = vpow2.f32 %v1137_v46  ;;  %v1487_v58 = vmax.f32 %v4009_v13, %v1486_v28  ;;  %v1485_v59 = vmax.f32 %v1480_v56, %v1484_v21  ;;  %2723 = vmatprep.subr.bf16.mxu1 %v3407_v7  ;;  %v3408_v39 = vld [vmem:[#allocation9 + $0x1c0] ss:$16 sps:$4 sm:$0xff]   ;;  %v3417_v42 = vld [vmem:[#allocation9 + $0x1e8] ss:$16 sps:$4 sm:$0xff]  }
 0x25e   :  { %3527 = vpow2.f32 %v1139_v45  ;;  %v1490_v60 = vsel %vm1073_vm0, %v4033_v54, -inf  ;;  %v1488_v63 = vsel %vm1073_vm0, %v4039_v36, -inf  ;;  %2644 = vmatpush1.bf16.msra.mxu0 %v3408_v39 }
 0x25f   :  { %3529 = vpow2.f32 %v1141_v47  ;;  %v1491_v62 = vmax.f32 %v1483_v57, %v1490_v60  ;;  %v1230_v0 = vpop.xlane.xlu1 %1229  ;;  %v1227_v1 = vpop.xlane.xlu0 %1226  ;;  %v1489_v5 = vmax.f32 %v1482_v44, %v1488_v63  ;;  %v1492_v8 = vmax.f32 %v1485_v59, %v1487_v58 }
 0x260   :  { %3531 = vpow2.f32 %v1143_v48  ;;  %v4048_v24 = vmul.f32 0.044194173, %v1230_v0  ;;  %v4050_v6 = vmul.f32 0.044194173, %v1227_v1  ;;  %2724 = vmatpush1.bf16.msra.mxu1 %v3405_v16 }
 0x261   :  { %v1493_v10 = vmax.f32 %v1489_v5, %v1491_v62  ;;  %2725 = vmatprep.subr.bf16.mxu1 %v3413_v25 }
 0x262   :  { %v4064_v27 = vsel %vm1073_vm0, %v4048_v24, -inf  ;;  %v4068_v30 = vsel %vm1073_vm0, %v4050_v6, -inf }
 0x263   :  { %v4052_v12 = vpop.eup %3517  ;;  %v1236_v13 = vpop.xlane.xlu1 %1235  ;;  %v1494_v20 = vmax.f32 %v1492_v8, %v1493_v10  ;;  %v3422_v8 = vld [vmem:[#allocation9 + $0x204] ss:$16 sps:$4 sm:$0xff]  }
 0x264   :  { %v1233_v15 = vpop.xlane.xlu0 %1232  ;;  %v4054_v18 = vpop.eup %3519  ;;  %v1145_v19 = vsel %vm1073_vm0, %v4052_v12, 0.0  ;;  %v4070_v31 = vmul.f32 0.044194173, %v1236_v13 }
 0x265   :  { %v4058_v9 = vpop.eup %3521  ;;  %v1146_v26 = vsel %vm1073_vm0, %v4054_v18, 0.0  ;;  %v1495_v34 = vsub.f32 %v4011_v14, %v1494_v20  ;;  %v1496_v35 = vsub.f32 %v4005_v3, %v1494_v20  ;;  %v4076_v38 = vmul.f32 0.044194173, %v1233_v15  ;;  %v3411_v3 = vld [vmem:[#allocation9 + $0x1c8] ss:$16 sps:$4 sm:$0xff]  }
 0x266   :  { %v4072_v32 = vpop.eup %3523  ;;  %v1147_v33 = vadd.f32 %v1146_v26, %v1145_v19  ;;  %v1148_v45 = vsel %vm1073_vm0, %v4058_v9, 0.0  ;;  %v1497_v47 = vsub.f32 %v4023_v41, %v1494_v20  ;;  %v1498_v48 = vsub.f32 %v4021_v40, %v1494_v20  ;;  %v3416_v14 = vld [vmem:[#allocation9 + $0x1e4] ss:$16 sps:$4 sm:$0xff]   ;;  %v3414_v40 = vld [vmem:[#allocation9 + $0x1e0] ss:$16 sps:$4 sm:$0xff]   ;;  %2726 = vmatpush1.bf16.msra.mxu1 %v3411_v3 }
 0x267   :  { %v4078_v46 = vpop.eup %3525  ;;  %v1499_v22 = vsub.f32 %v4027_v29, %v1494_v20  ;;  %v1242_v51 = vpop.xlane.xlu1 %1241  ;;  %v1150_v28 = vsel %vm1073_vm0, %v4072_v32, 0.0  ;;  %v1500_v21 = vsub.f32 %v4025_v50, %v1494_v20  ;;  %v1501_v41 = vsub.f32 %v4039_v36, %v1494_v20  ;;  %2645 = vmatprep.subr.bf16.mxu0 %v3416_v14  ;;  %2727 = vmatprep.subr.bf16.mxu1 %v3419_v55  ;;  %v3425_v26 = vld [vmem:[#allocation9 + $0x20c] ss:$16 sps:$4 sm:$0xff]  }
 0x268   :  { %v1239_v52 = vpop.xlane.xlu0 %1238  ;;  %v4085_v23 = vpop.eup %3527  ;;  %v1149_v53 = vadd.f32 %v1148_v45, %v1147_v33  ;;  %v1152_v56 = vsel %vm1073_vm0, %v4078_v46, 0.0  ;;  %v1502_v57 = vsub.f32 %v4033_v54, %v1494_v20  ;;  %v1503_v37 = vmul.f32 1.442695, %v1495_v34  ;;  %2646 = vmatpush1.bf16.msra.mxu0 %v3414_v40 }
 0x269   :  { %v4091_v29 = vpop.eup %3529  ;;  %v1505_v58 = vmul.f32 1.442695, %v1496_v35  ;;  %v1154_v50 = vsel %vm1073_vm0, %v4085_v23, 0.0  ;;  %v1507_v61 = vmul.f32 1.442695, %v1497_v47  ;;  %v1260_v11 = vsel %vm1073_vm0, %v4070_v31, -inf  ;;  %2656 = vmatprep.subr.bf16.mxu0 %v3422_v8 }
 0x26a   :  { %v4096_v59 = vpop.eup %3531  ;;  %v1151_v60 = vadd.f32 %v1150_v28, %v1149_v53  ;;  %v1156_v36 = vsel %vm1073_vm0, %v4091_v29, 0.0  ;;  %3533 = vpow2.f32 %v1503_v37  ;;  %v1509_v62 = vmul.f32 1.442695, %v1498_v48  ;;  %2728 = vmatpush1.bf16.msra.mxu1 %v3417_v42 }
 0x26b   :  { %v1158_v44 = vsel %vm1073_vm0, %v4096_v59, 0.0  ;;  %v1511_v54 = vmul.f32 1.442695, %v1499_v22  ;;  %v1248_v63 = vpop.xlane.xlu1 %1247  ;;  %3535 = vpow2.f32 %v1505_v58  ;;  %v1513_v2 = vmul.f32 1.442695, %v1500_v21  ;;  %2738 = vmatprep.subr.bf16.mxu1 %v3425_v26  ;;  %v4192_v26 = vld [vmem:[#allocation3 + $0x10] sm:$0xff] }
 0x26c   :  { %v1245_v0 = vpop.xlane.xlu0 %1244  ;;  %v1153_v1 = vadd.f32 %v1152_v56, %v1151_v60  ;;  %v1515_v4 = vmul.f32 1.442695, %v1501_v41  ;;  %3537 = vpow2.f32 %v1507_v61  ;;  %v1517_v5 = vmul.f32 1.442695, %v1502_v57 }
 0x26d   :  { %v4104_v7 = vmul.f32 0.044194173, %v1242_v51  ;;  %v4108_v13 = vmul.f32 0.044194173, %v1239_v52  ;;  %v4110_v15 = vmul.f32 0.044194173, %v1248_v63  ;;  %3539 = vpow2.f32 %v1509_v62 }
 0x26e   :  { %v1155_v10 = vadd.f32 %v1154_v50, %v1153_v1  ;;  %v1259_v16 = vsel %vm1073_vm0, %v4076_v38, -inf  ;;  %v4116_v19 = vmul.f32 0.044194173, %v1245_v0  ;;  %3541 = vpow2.f32 %v1511_v54 }
 0x26f   :  { %v1263_v17 = vsel %vm1073_vm0, %v4104_v7, -inf  ;;  %v1668_v20 = vpop.xlane.xlu1 %1667  ;;  %v1261_v35 = vsel %vm1073_vm0, %v4108_v13, -inf  ;;  %3543 = vpow2.f32 %v1513_v2  ;;  %v1267_v45 = vsel %vm1073_vm0, %v4110_v15, -inf }
 0x270   :  { %v1665_v25 = vpop.xlane.xlu0 %1664  ;;  %v1157_v33 = vadd.f32 %v1156_v36, %v1155_v10  ;;  %v1264_v34 = vmax.f32 %v4064_v27, %v1263_v17  ;;  %v1262_v39 = vmax.f32 %v4068_v30, %v1261_v35  ;;  %v1265_v47 = vsel %vm1073_vm0, %v4116_v19, -inf }
 0x271   :  { %v1268_v22 = vmax.f32 %v1260_v11, %v1267_v45  ;;  %v1266_v51 = vmax.f32 %v1259_v16, %v1265_v47  ;;  %3545 = vpow2.f32 %v1515_v4  ;;  %v4134_v41 = vmul.f32 0.044194173, %v1668_v20 }
 0x272   :  { %v1159_v48 = vadd.f32 %v1158_v44, %v1157_v33  ;;  %v1269_v52 = vmax.f32 %v1262_v39, %v1264_v34  ;;  %v4136_v40 = vmul.f32 0.044194173, %v1665_v25  ;;  %v4188_v25 = vld [vmem:[#allocation3] sm:$0xff]  ;;  %v4202_v39 = vld [vmem:[#allocation3 + $0x18] sm:$0xff] }
 0x273   :  { %v1270_v27 = vmax.f32 %v1266_v51, %v1268_v22  ;;  %v1674_v3 = vpop.xlane.xlu1 %1673  ;;  %v4158_v62 = vsel %vm1073_vm0, %v4134_v41, -inf }
 0x274   :  { %3547 = vrcp.f32 %v1159_v48  ;;  %v1671_v14 = vpop.xlane.xlu0 %1670  ;;  %v4126_v53 = vpop.eup %3533  ;;  %v4142_v57 = vmul.f32 0.044194173, %v1674_v3  ;;  %v4162_v54 = vsel %vm1073_vm0, %v4136_v40, -inf }
 0x275   :  { %3549 = vpow2.f32 %v1517_v5  ;;  %v4128_v30 = vpop.eup %3535  ;;  %v1519_v28 = vsel %vm1073_vm0, %v4126_v53, 0.0  ;;  %v4132_v21 = vmax.f32 %v1269_v52, %v1270_v27  ;;  %v4144_v37 = vmul.f32 0.044194173, %v1671_v14  ;;  %v4212_v14 = vld [vmem:[#allocation3 + $0x20] sm:$0xff] }
 0x276   :  { %v4138_v55 = vpop.eup %3537  ;;  %v1520_v56 = vsel %vm1073_vm0, %v4128_v30, 0.0  ;;  %v4168_v0 = vsel %vm1073_vm0, %v4142_v57, -inf }
 0x277   :  { %v1521_v58 = vadd.f32 %v1520_v56, %v1519_v28  ;;  %v1272_v60 = vsub.f32 %v4050_v6, %v4132_v21  ;;  %v1273_v50 = vsub.f32 %v4048_v24, %v4132_v21  ;;  %v4150_v36 = vpop.eup %3539  ;;  %v1522_v61 = vsel %vm1073_vm0, %v4138_v55, 0.0  ;;  %v1680_v34 = vpop.xlane.xlu1 %1679  ;;  %v4214_v28 = vld [vmem:[#allocation3 + $0x28] sm:$0xff] }
 0x278   :  { %v4154_v42 = vpop.eup %3541  ;;  %v4172_v1 = vsel %vm1073_vm0, %v4144_v37, -inf  ;;  %v1524_v2 = vsel %vm1073_vm0, %v4150_v36, 0.0  ;;  %v1274_v4 = vsub.f32 %v4076_v38, %v4132_v21  ;;  %v1275_v5 = vsub.f32 %v4070_v31, %v4132_v21  ;;  %v4190_v38 = vld [vmem:[#allocation3 + $0x8] sm:$0xff] }
 0x279   :  { %v1523_v44 = vadd.f32 %v1522_v61, %v1521_v58  ;;  %v4164_v6 = vpop.eup %3543  ;;  %v1280_v63 = vmul.f32 1.442695, %v1272_v60  ;;  %v1282_v24 = vmul.f32 1.442695, %v1273_v50  ;;  %v1276_v8 = vsub.f32 %v4108_v13, %v4132_v21 }
 0x27a   :  { %v1526_v16 = vsel %vm1073_vm0, %v4154_v42, 0.0  ;;  %v1277_v17 = vsub.f32 %v4104_v7, %v4132_v21  ;;  %v1528_v31 = vsel %vm1073_vm0, %v4164_v6, 0.0  ;;  %v1278_v13 = vsub.f32 %v4116_v19, %v4132_v21  ;;  %v1677_v7 = vpop.xlane.xlu0 %1676 }
 0x27b   :  { %v4182_v10 = vpop.eup %3545  ;;  %v1525_v11 = vadd.f32 %v1524_v2, %v1523_v44  ;;  %3551 = vpow2.f32 %v1280_v63  ;;  %v1279_v33 = vsub.f32 %v4110_v15, %v4132_v21  ;;  %v1284_v3 = vmul.f32 1.442695, %v1274_v4 }
 0x27c   :  { %3553 = vpow2.f32 %v1282_v24  ;;  %v1530_v27 = vsel %vm1073_vm0, %v4182_v10, 0.0  ;;  %v1288_v58 = vmul.f32 1.442695, %v1276_v8  ;;  %v1290_v44 = vmul.f32 1.442695, %v1277_v17 }
 0x27d   :  { %v1527_v56 = vadd.f32 %v1526_v16, %v1525_v11  ;;  %v1686_v11 = vpop.xlane.xlu1 %1685  ;;  %3555 = vpow2.f32 %v1284_v3 }
 0x27e   :  { %v3548_v20 = vpop.eup %3547  ;;  %v1683_v16 = vpop.xlane.xlu0 %1682 }
 0x27f   :  { %v4200_v35 = vpop.eup %3549  ;;  %v1161_v45 = vmul.f32 %v3548_v20, %v4052_v12  ;;  %v1162_v47 = vmul.f32 %v3548_v20, %v4054_v18  ;;  %v1163_v48 = vmul.f32 %v3548_v20, %v4058_v9  ;;  %v1164_v22 = vmul.f32 %v3548_v20, %v4072_v32 }
 0x280   :  { %v1165_v51 = vmul.f32 %v3548_v20, %v4078_v46  ;;  %v1166_v52 = vmul.f32 %v3548_v20, %v4085_v23  ;;  %v1532_v46 = vsel %vm1073_vm0, %v4200_v35, 0.0  ;;  %v1286_v23 = vmul.f32 1.442695, %v1275_v5  ;;  %v4230_v5 = vld [vmem:[#allocation3 + $0x38] sm:$0xff] }
 0x281   :  { %v1169_v12 = vmul.f32 %v1161_v45, %v4188_v25  ;;  %v1170_v18 = vmul.f32 %v1162_v47, %v4190_v38  ;;  %v1171_v9 = vmul.f32 %v1163_v48, %v4192_v26  ;;  %v1172_v32 = vmul.f32 %v1164_v22, %v4202_v39  ;;  %v4228_v45 = vld [vmem:[#allocation3 + $0x30] sm:$0xff] }
 0x282   :  { %v1167_v60 = vmul.f32 %v3548_v20, %v4091_v29  ;;  %v1168_v63 = vmul.f32 %v3548_v20, %v4096_v59  ;;  %v1173_v24 = vmul.f32 %v1165_v51, %v4212_v14  ;;  %v1174_v2 = vmul.f32 %v1166_v52, %v4214_v28 }
 0x283   :  { %v1177_v50 = vsel %vm1073_vm0, %v1169_v12, 0.0  ;;  %v1178_v61 = vsel %vm1073_vm0, %v1170_v18, 0.0  ;;  %v1180_v29 = vsel %vm1073_vm0, %v1171_v9, 0.0  ;;  %v1529_v8 = vadd.f32 %v1528_v31, %v1527_v56 }
 0x284   :  { %v1179_v4 = vadd.f32 %v1178_v61, %v1177_v50  ;;  %v4233_v47 = vmul.f32 0.044194173, %v1680_v34  ;;  %v1182_v59 = vsel %vm1073_vm0, %v1172_v32, 0.0  ;;  %3557 = vpow2.f32 %v1286_v23 }
 0x285   :  { %v4236_v20 = vmul.f32 0.044194173, %v1677_v7  ;;  %v4238_v48 = vpop.eup %3551  ;;  %v1531_v22 = vadd.f32 %v1530_v27, %v1529_v8  ;;  %v4242_v52 = vmul.f32 0.044194173, %v1686_v11  ;;  %v4244_v12 = vmul.f32 0.044194173, %v1683_v16 }
 0x286   :  { %v1181_v17 = vadd.f32 %v1180_v29, %v1179_v4  ;;  %v1701_v51 = vsel %vm1073_vm0, %v4233_v47, -inf  ;;  %v4246_v31 = vpop.eup %3553  ;;  %v1175_v34 = vmul.f32 %v1167_v60, %v4228_v45  ;;  %v1176_v3 = vmul.f32 %v1168_v63, %v4230_v5 }
 0x287   :  { %3559 = vpow2.f32 %v1288_v58  ;;  %v1184_v7 = vsel %vm1073_vm0, %v1173_v24, 0.0  ;;  %v1533_v9 = vadd.f32 %v1532_v46, %v1531_v22  ;;  %v1296_v27 = vsel %vm1073_vm0, %v4238_v48, 0.0 }
 0x288   :  { %v1183_v18 = vadd.f32 %v1182_v59, %v1181_v17  ;;  %v1699_v56 = vsel %vm1073_vm0, %v4236_v20, -inf  ;;  %v1297_v23 = vsel %vm1073_vm0, %v4246_v31, 0.0  ;;  %v1702_v50 = vmax.f32 %v4158_v62, %v1701_v51  ;;  %v4273_v17 = vpop.eup %3555 }
 0x289   :  { %v1700_v60 = vmax.f32 %v4162_v54, %v1699_v56  ;;  %v1186_v61 = vsel %vm1073_vm0, %v1174_v2, 0.0  ;;  %3561 = vrcp.f32 %v1533_v9  ;;  %v1705_v46 = vsel %vm1073_vm0, %v4242_v52, -inf }
 0x28a   :  { %v1185_v32 = vadd.f32 %v1184_v7, %v1183_v18  ;;  %v1703_v58 = vsel %vm1073_vm0, %v4244_v12, -inf  ;;  %v1292_v24 = vmul.f32 1.442695, %v1278_v13  ;;  %v1706_v4 = vmax.f32 %v4168_v0, %v1705_v46 }
 0x28b   :  { %v1704_v62 = vmax.f32 %v4172_v1, %v1703_v58  ;;  %v1188_v54 = vsel %vm1073_vm0, %v1175_v34, 0.0  ;;  %v1294_v2 = vmul.f32 1.442695, %v1279_v33  ;;  %v1298_v11 = vadd.f32 %v1297_v23, %v1296_v27 }
 0x28c   :  { %v1187_v63 = vadd.f32 %v1186_v61, %v1185_v32  ;;  %3563 = vpow2.f32 %v1290_v44  ;;  %v1707_v29 = vmax.f32 %v1700_v60, %v1702_v50  ;;  %v1190_v19 = vsel %vm1073_vm0, %v1176_v3, 0.0 }
 0x28d   :  { %v1708_v8 = vmax.f32 %v1704_v62, %v1706_v4  ;;  %v1543_v0 = vcombine.high %v4188_v25, %v4188_v25  ;;  %v1551_v1 = vcombine.high %v4190_v38, %v4190_v38  ;;  %v1559_v13 = vcombine.high %v4192_v26, %v4192_v26 }
 0x28e   :  { %v1189_v16 = vadd.f32 %v1188_v54, %v1187_v63  ;;  %v4282_v15 = vpop.eup %3557  ;;  %3565 = vpow2.f32 %v1292_v24  ;;  %v1299_v33 = vsel %vm1073_vm0, %v4273_v17, 0.0  ;;  %v1567_v59 = vcombine.high %v4202_v39, %v4202_v39 }
 0x28f   :  { %v4286_v44 = vmax.f32 %v1707_v29, %v1708_v8  ;;  %v1300_v22 = vadd.f32 %v1299_v33, %v1298_v11  ;;  %3567 = vpow2.f32 %v1294_v2  ;;  %v1301_v34 = vsel %vm1073_vm0, %v4282_v15, 0.0 }
 0x290   :  { %v1191_v21 = vadd.f32 %v1190_v19, %v1189_v16  ;;  %v1575_v3 = vcombine.high %v4212_v14, %v4212_v14  ;;  %v1583_v18 = vcombine.high %v4214_v28, %v4214_v28  ;;  %v1591_v7 = vcombine.high %v4228_v45, %v4228_v45 }
 0x291   :  { %v4290_v51 = vpop.eup %3559  ;;  %v1302_v9 = vadd.f32 %v1301_v34, %v1300_v22  ;;  %v4301_v27 = vrot.slane %v1543_v0, %v3850_v49  ;;  %v4304_v56 = vrot.slane %v1551_v1, %v3850_v49  ;;  %v4307_v32 = vrot.slane %v1559_v13, %v3850_v49 }
 0x292   :  { %1192 = vst [vmem:[#allocation2] sm:$0x3] %v1191_v21  ;;  %v1710_v23 = vsub.f32 %v4136_v40, %v4286_v44  ;;  %v4312_v60 = vrot.slane %v1567_v59, %v3850_v49  ;;  %v1599_v61 = vcombine.high %v4230_v5, %v4230_v5  ;;  %v1303_v46 = vsel %vm1073_vm0, %v4290_v51, 0.0 }
 0x293   :  { %v3562_v50 = vpop.eup %3561  ;;  %v1711_v58 = vsub.f32 %v4134_v41, %v4286_v44  ;;  %v4326_v54 = vrot.slane %v1575_v3, %v3850_v49  ;;  %v1304_v2 = vadd.f32 %v1303_v46, %v1302_v9  ;;  %v1712_v11 = vsub.f32 %v4144_v37, %v4286_v44 }
 0x294   :  { %v1535_v63 = vmul.f32 %v3562_v50, %v4126_v53  ;;  %v1536_v24 = vmul.f32 %v3562_v50, %v4128_v30  ;;  %v1537_v4 = vmul.f32 %v3562_v50, %v4138_v55  ;;  %v1538_v40 = vmul.f32 %v3562_v50, %v4150_v36 }
 0x295   :  { %v1539_v62 = vmul.f32 %v3562_v50, %v4154_v42  ;;  %v1718_v55 = vmul.f32 1.442695, %v1710_v23  ;;  %v4336_v36 = vrot.slane %v1583_v18, %v3850_v49  ;;  %v4339_v42 = vrot.slane %v1591_v7, %v3850_v49 }
 0x296   :  { %v4330_v16 = vpop.eup %3563  ;;  %v1615_v41 = vmul.f32 %v4301_v27, %v1535_v63  ;;  %v1616_v53 = vmul.f32 %v4304_v56, %v1536_v24  ;;  %v1617_v30 = vmul.f32 %v4307_v32, %v1537_v4  ;;  %v4342_v29 = vrot.slane %v1599_v61, %v3850_v49 }
 0x297   :  { %v1720_v8 = vmul.f32 1.442695, %v1711_v58  ;;  %v1540_v19 = vmul.f32 %v3562_v50, %v4164_v6  ;;  %v1618_v0 = vmul.f32 %v4312_v60, %v1538_v40  ;;  %v1541_v21 = vmul.f32 %v3562_v50, %v4182_v10 }
 0x298   :  { %v4344_v37 = vpop.eup %3565  ;;  %v1623_v1 = vsel %vm1073_vm0, %v1615_v41, 0.0  ;;  %v1624_v13 = vsel %vm1073_vm0, %v1616_v53, 0.0  ;;  %v1619_v33 = vmul.f32 %v4326_v54, %v1539_v62  ;;  %v1305_v22 = vsel %vm1073_vm0, %v4330_v16, 0.0 }
 0x299   :  { %v1625_v59 = vadd.f32 %v1624_v13, %v1623_v1  ;;  %v4354_v34 = vpop.eup %3567  ;;  %v1626_v3 = vsel %vm1073_vm0, %v1617_v30, 0.0  ;;  %v1306_v18 = vadd.f32 %v1305_v22, %v1304_v2  ;;  %3569 = vpow2.f32 %v1718_v55 }
 0x29a   :  { %v1722_v6 = vmul.f32 1.442695, %v1712_v11  ;;  %v1307_v9 = vsel %vm1073_vm0, %v4344_v37, 0.0  ;;  %v1713_v10 = vsub.f32 %v4142_v57, %v4286_v44  ;;  %3571 = vpow2.f32 %v1720_v8 }
 0x29b   :  { %v1627_v7 = vadd.f32 %v1626_v3, %v1625_v59  ;;  %v1542_v23 = vmul.f32 %v3562_v50, %v4200_v35  ;;  %v1620_v61 = vmul.f32 %v4336_v36, %v1540_v19  ;;  %v1628_v46 = vsel %vm1073_vm0, %v1618_v0, 0.0 }
 0x29c   :  { %v1308_v58 = vadd.f32 %v1307_v9, %v1306_v18  ;;  %v1309_v24 = vsel %vm1073_vm0, %v4354_v34, 0.0  ;;  %v1714_v4 = vsub.f32 %v4236_v20, %v4286_v44  ;;  %3573 = vpow2.f32 %v1722_v6 }
 0x29d   :  { %v1629_v63 = vadd.f32 %v1628_v46, %v1627_v7  ;;  %v1621_v40 = vmul.f32 %v4339_v42, %v1541_v21  ;;  %v1630_v57 = vsel %vm1073_vm0, %v1619_v33, 0.0  ;;  %v1715_v35 = vsub.f32 %v4233_v47, %v4286_v44 }
 0x29e   :  { %v1310_v62 = vadd.f32 %v1309_v24, %v1308_v58  ;;  %v1724_v50 = vmul.f32 1.442695, %v1713_v10  ;;  %v1622_v11 = vmul.f32 %v4342_v29, %v1542_v23  ;;  %v1632_v41 = vsel %vm1073_vm0, %v1620_v61, 0.0 }
 0x29f   :  { %v1631_v2 = vadd.f32 %v1630_v57, %v1629_v63  ;;  %v1716_v20 = vsub.f32 %v4244_v12, %v4286_v44  ;;  %v1726_v30 = vmul.f32 1.442695, %v1714_v4  ;;  %v1634_v55 = vsel %vm1073_vm0, %v1621_v40, 0.0 }
 0x2a0   :  { %3575 = vrcp.f32 %v1310_v62  ;;  %v1717_v8 = vsub.f32 %v4242_v52, %v4286_v44  ;;  %v1728_v0 = vmul.f32 1.442695, %v1715_v35  ;;  %v1636_v1 = vsel %vm1073_vm0, %v1622_v11, 0.0 }
 0x2a1   :  { %v1633_v53 = vadd.f32 %v1632_v41, %v1631_v2  ;;  %3577 = vpow2.f32 %v1724_v50  ;;  %v1334_v13 = vrot.slane %v4188_v25, %v3850_v49  ;;  %v1342_v21 = vrot.slane %v4190_v38, %v3850_v49 }
 0x2a2   :  { %v1350_v12 = vrot.slane %v4192_v26, %v3850_v49  ;;  %3579 = vpow2.f32 %v1726_v30  ;;  %v1730_v52 = vmul.f32 1.442695, %v1716_v20  ;;  %v1358_v22 = vrot.slane %v4202_v39, %v3850_v49 }
 0x2a3   :  { %v1635_v19 = vadd.f32 %v1634_v55, %v1633_v53  ;;  %v4379_v47 = vpop.eup %3569  ;;  %v1732_v3 = vmul.f32 1.442695, %v1717_v8  ;;  %3581 = vpow2.f32 %v1728_v0  ;;  %v1366_v7 = vrot.slane %v4212_v14, %v3850_v49 }
 0x2a4   :  { %v4388_v33 = vpop.eup %3571  ;;  %v1734_v44 = vsel %vm1073_vm0, %v4379_v47, 0.0  ;;  %v1335_v10 = vcombine.high %v1334_v13, %v1334_v13  ;;  %v1343_v23 = vcombine.high %v1342_v21, %v1342_v21  ;;  %v1351_v61 = vcombine.high %v1350_v12, %v1350_v12 }
 0x2a5   :  { %v1637_v59 = vadd.f32 %v1636_v1, %v1635_v19  ;;  %v1735_v18 = vsel %vm1073_vm0, %v4388_v33, 0.0  ;;  %3583 = vpow2.f32 %v1730_v52  ;;  %v1359_v58 = vcombine.high %v1358_v22, %v1358_v22 }
 0x2a6   :  { %v4396_v6 = vpop.eup %3573  ;;  %v1736_v9 = vadd.f32 %v1735_v18, %v1734_v44  ;;  %v1374_v63 = vrot.slane %v4214_v28, %v3850_v49  ;;  %3585 = vpow2.f32 %v1732_v3  ;;  %v1367_v2 = vcombine.high %v1366_v7, %v1366_v7 }
 0x2a7   :  { %1638 = vst [vmem:[#allocation2 + $0x4] sm:$0x3] %v1637_v59  ;;  %v1737_v24 = vsel %vm1073_vm0, %v4396_v6, 0.0  ;;  %v1382_v35 = vrot.slane %v4228_v45, %v3850_v49 }
 0x2a8   :  { %v1738_v50 = vadd.f32 %v1737_v24, %v1736_v9  ;;  %v1375_v55 = vcombine.high %v1374_v63, %v1374_v63 }
 0x2a9   :  { %v1383_v0 = vcombine.high %v1382_v35, %v1382_v35 }
 0x2aa   :  { %v3576_v46 = vpop.eup %3575 }
 0x2ab   :  { %v1312_v4 = vmul.f32 %v3576_v46, %v4238_v48  ;;  %v1313_v40 = vmul.f32 %v3576_v46, %v4246_v31  ;;  %v1314_v57 = vmul.f32 %v3576_v46, %v4273_v17  ;;  %v1315_v62 = vmul.f32 %v3576_v46, %v4282_v15  ;;  %v3578_v11 = vpop.eup %3577 }
 0x2ac   :  { %v1316_v41 = vmul.f32 %v3576_v46, %v4290_v51  ;;  %v1390_v48 = vrot.slane %v4230_v5, %v3850_v49  ;;  %v3580_v31 = vpop.eup %3579  ;;  %v1317_v17 = vmul.f32 %v3576_v46, %v4330_v16  ;;  %v1739_v13 = vsel %vm1073_vm0, %v3578_v11, 0.0 }
 0x2ad   :  { %v1400_v53 = vmul.f32 %v1335_v10, %v1312_v4  ;;  %v1401_v20 = vmul.f32 %v1343_v23, %v1313_v40  ;;  %v1402_v30 = vmul.f32 %v1351_v61, %v1314_v57  ;;  %v1403_v8 = vmul.f32 %v1359_v58, %v1315_v62  ;;  %v3582_v51 = vpop.eup %3581 }
 0x2ae   :  { %v1318_v21 = vmul.f32 %v3576_v46, %v4344_v37  ;;  %v1404_v12 = vmul.f32 %v1367_v2, %v1316_v41  ;;  %v1740_v52 = vadd.f32 %v1739_v13, %v1738_v50  ;;  %v1391_v44 = vcombine.high %v1390_v48, %v1390_v48 }
 0x2af   :  { %v1408_v15 = vsel %vm1073_vm0, %v1400_v53, 0.0  ;;  %v1409_v19 = vsel %vm1073_vm0, %v1401_v20, 0.0  ;;  %v1411_v59 = vsel %vm1073_vm0, %v1402_v30, 0.0  ;;  %v1741_v16 = vsel %vm1073_vm0, %v3580_v31, 0.0  ;;  %v3584_v3 = vpop.eup %3583 }
 0x2b0   :  { %v1410_v1 = vadd.f32 %v1409_v19, %v1408_v15  ;;  %v1319_v18 = vmul.f32 %v3576_v46, %v4354_v34  ;;  %v1405_v7 = vmul.f32 %v1375_v55, %v1317_v17  ;;  %v1413_v9 = vsel %vm1073_vm0, %v1403_v8, 0.0  ;;  %v3586_v23 = vpop.eup %3585 }
 0x2b1   :  { %v1742_v10 = vadd.f32 %v1741_v16, %v1740_v52  ;;  %v1743_v58 = vsel %vm1073_vm0, %v3582_v51, 0.0  ;;  %v1406_v37 = vmul.f32 %v1383_v0, %v1318_v21  ;;  %v1415_v63 = vsel %vm1073_vm0, %v1404_v12, 0.0 }
 0x2b2   :  { %v1412_v22 = vadd.f32 %v1411_v59, %v1410_v1  ;;  %v1745_v40 = vsel %vm1073_vm0, %v3584_v3, 0.0  ;;  %v1407_v57 = vmul.f32 %v1391_v44, %v1319_v18  ;;  %v1417_v62 = vsel %vm1073_vm0, %v1405_v7, 0.0 }
 0x2b3   :  { %v1744_v24 = vadd.f32 %v1743_v58, %v1742_v10  ;;  %v1747_v46 = vsel %vm1073_vm0, %v3586_v23, 0.0  ;;  %v1419_v35 = vsel %vm1073_vm0, %v1406_v37, 0.0  ;;  %v1758_v30 = vcombine.high %v4301_v27, %v4301_v27 }
 0x2b4   :  { %v1414_v61 = vadd.f32 %v1413_v9, %v1412_v22  ;;  %v1421_v53 = vsel %vm1073_vm0, %v1407_v57, 0.0  ;;  %v1759_v55 = vcombine.high %v4304_v56, %v4304_v56  ;;  %v1760_v48 = vcombine.high %v4307_v32, %v4307_v32 }
 0x2b5   :  { %v1746_v2 = vadd.f32 %v1745_v40, %v1744_v24  ;;  %v1761_v8 = vcombine.high %v4312_v60, %v4312_v60  ;;  %v1762_v27 = vcombine.high %v4326_v54, %v4326_v54  ;;  %v1763_v32 = vcombine.high %v4336_v36, %v4336_v36 }
 0x2b6   :  { %v1416_v4 = vadd.f32 %v1415_v63, %v1414_v61  ;;  %v1765_v16 = vcombine.high %v4342_v29, %v4342_v29 }
 0x2b7   :  { %v1748_v50 = vadd.f32 %v1747_v46, %v1746_v2  ;;  %v3420_v2 = vld [vmem:[#allocation9 + $0x200] ss:$16 sps:$4 sm:$0xff]  }
 0x2b8   :  { %v1418_v34 = vadd.f32 %v1417_v62, %v1416_v4 }
 0x2b9   :  { %3587 = vrcp.f32 %v1748_v50 }
 0x2ba   :  { %v1420_v41 = vadd.f32 %v1419_v35, %v1418_v34  ;;  %v3423_v34 = vld [vmem:[#allocation9 + $0x208] ss:$16 sps:$4 sm:$0xff]  }
 0x2bc   :  { %v1422_v20 = vadd.f32 %v1421_v53, %v1420_v41  ;;  %v3429_v41 = vld [vmem:[#allocation9 + $0x224] ss:$16 sps:$4 sm:$0xff]   ;;  %v3432_v53 = vld [vmem:[#allocation9 + $0x22c] ss:$16 sps:$4 sm:$0xff]  }
 0x2be   :  { %1423 = vst [vmem:[#allocation2 + $0x2] sm:$0x3] %v1422_v20  ;;  %v3427_v20 = vld [vmem:[#allocation9 + $0x220] ss:$16 sps:$4 sm:$0xff]  }
 0x2c3   :  { %v3588_v17 = vpop.eup %3587 }
 0x2c4   :  { %v1750_v15 = vmul.f32 %v3588_v17, %v4379_v47  ;;  %v1751_v19 = vmul.f32 %v3588_v17, %v4388_v33  ;;  %v1752_v0 = vmul.f32 %v3588_v17, %v4396_v6  ;;  %v1753_v1 = vmul.f32 %v3588_v17, %v3578_v11 }
 0x2c5   :  { %v1754_v13 = vmul.f32 %v3588_v17, %v3580_v31  ;;  %v1755_v59 = vmul.f32 %v3588_v17, %v3582_v51  ;;  %v1756_v44 = vmul.f32 %v3588_v17, %v3584_v3  ;;  %v1764_v6 = vcombine.high %v4339_v42, %v4339_v42 }
 0x2c6   :  { %v1774_v21 = vmul.f32 %v1758_v30, %v1750_v15  ;;  %v1775_v56 = vmul.f32 %v1759_v55, %v1751_v19  ;;  %v1776_v12 = vmul.f32 %v1760_v48, %v1752_v0  ;;  %v1777_v52 = vmul.f32 %v1761_v8, %v1753_v1  ;;  %v3430_v30 = vld [vmem:[#allocation9 + $0x228] ss:$16 sps:$4 sm:$0xff]   ;;  %v3435_v55 = vld [vmem:[#allocation9 + $0x244] ss:$16 sps:$4 sm:$0xff]   ;;  %v3438_v48 = vld [vmem:[#allocation9 + $0x24c] ss:$16 sps:$4 sm:$0xff]  }
 0x2c7   :  { %v1778_v11 = vmul.f32 %v1762_v27, %v1754_v13  ;;  %v1757_v22 = vmul.f32 %v3588_v17, %v3586_v23  ;;  %v1779_v36 = vmul.f32 %v1763_v32, %v1755_v59  ;;  %v1780_v7 = vmul.f32 %v1764_v6, %v1756_v44  ;;  %v3433_v17 = vld [vmem:[#allocation9 + $0x240] ss:$16 sps:$4 sm:$0xff]   ;;  %v3436_v8 = vld [vmem:[#allocation9 + $0x248] ss:$16 sps:$4 sm:$0xff]   ;;  %v3441_v15 = vld [vmem:[#allocation9 + $0x264] ss:$16 sps:$4 sm:$0xff]  }
 0x2c8   :  { %v1782_v60 = vsel %vm1073_vm0, %v1774_v21, 0.0  ;;  %v1783_v47 = vsel %vm1073_vm0, %v1775_v56, 0.0  ;;  %v1785_v54 = vsel %vm1073_vm0, %v1776_v12, 0.0  ;;  %v1787_v51 = vsel %vm1073_vm0, %v1777_v52, 0.0  ;;  %v3444_v19 = vld [vmem:[#allocation9 + $0x26c] ss:$16 sps:$4 sm:$0xff]  }
 0x2c9   :  { %v1784_v33 = vadd.f32 %v1783_v47, %v1782_v60  ;;  %v1789_v9 = vsel %vm1073_vm0, %v1778_v11, 0.0  ;;  %v1781_v3 = vmul.f32 %v1765_v16, %v1757_v22  ;;  %v1791_v61 = vsel %vm1073_vm0, %v1779_v36, 0.0  ;;  %v3439_v0 = vld [vmem:[#allocation9 + $0x260] ss:$16 sps:$4 sm:$0xff]   ;;  %v3442_v1 = vld [vmem:[#allocation9 + $0x268] ss:$16 sps:$4 sm:$0xff]  }
 0x2ca   :  { %v1793_v58 = vsel %vm1073_vm0, %v1780_v7, 0.0  ;;  %v3447_v27 = vld [vmem:[#allocation9 + $0x284] ss:$16 sps:$4 sm:$0xff]   ;;  %v3450_v13 = vld [vmem:[#allocation9 + $0x28c] ss:$16 sps:$4 sm:$0xff]  }
 0x2cb   :  { %v1786_v31 = vadd.f32 %v1785_v54, %v1784_v33  ;;  %v1795_v23 = vsel %vm1073_vm0, %v1781_v3, 0.0  ;;  %v3445_v21 = vld [vmem:[#allocation9 + $0x280] ss:$16 sps:$4 sm:$0xff]   ;;  %v3448_v56 = vld [vmem:[#allocation9 + $0x288] ss:$16 sps:$4 sm:$0xff]  }
 0x2cc   :  { %v3453_v12 = vld [vmem:[#allocation9 + $0x2a4] ss:$16 sps:$4 sm:$0xff]   ;;  %v3456_v32 = vld [vmem:[#allocation9 + $0x2ac] ss:$16 sps:$4 sm:$0xff]   ;;  %v3451_v59 = vld [vmem:[#allocation9 + $0x2a0] ss:$16 sps:$4 sm:$0xff]  }
 0x2cd   :  { %v1788_v18 = vadd.f32 %v1787_v51, %v1786_v31  ;;  %v3454_v52 = vld [vmem:[#allocation9 + $0x2a8] ss:$16 sps:$4 sm:$0xff]   ;;  %v3459_v60 = vld [vmem:[#allocation9 + $0x2c4] ss:$16 sps:$4 sm:$0xff]   ;;  %v3462_v47 = vld [vmem:[#allocation9 + $0x2cc] ss:$16 sps:$4 sm:$0xff]  }
 0x2ce   :  { %v3457_v33 = vld [vmem:[#allocation9 + $0x2c0] ss:$16 sps:$4 sm:$0xff]   ;;  %v3460_v44 = vld [vmem:[#allocation9 + $0x2c8] ss:$16 sps:$4 sm:$0xff]   ;;  %v3465_v6 = vld [vmem:[#allocation9 + $0x2e4] ss:$16 sps:$4 sm:$0xff]  }
 0x2cf   :  { %v1790_v10 = vadd.f32 %v1789_v9, %v1788_v18  ;;  %v3468_v11 = vld [vmem:[#allocation9 + $0x2ec] ss:$16 sps:$4 sm:$0xff]   ;;  %v3463_v54 = vld [vmem:[#allocation9 + $0x2e0] ss:$16 sps:$4 sm:$0xff]   ;;  %v3466_v31 = vld [vmem:[#allocation9 + $0x2e8] ss:$16 sps:$4 sm:$0xff]  }
 0x2d0   :  { %v3471_v22 = vld [vmem:[#allocation9 + $0x304] ss:$16 sps:$4 sm:$0xff]   ;;  %v3474_v16 = vld [vmem:[#allocation9 + $0x30c] ss:$16 sps:$4 sm:$0xff]   ;;  %v3469_v36 = vld [vmem:[#allocation9 + $0x300] ss:$16 sps:$4 sm:$0xff]  }
 0x2d1   :  { %v1792_v42 = vadd.f32 %v1791_v61, %v1790_v10  ;;  %v3472_v51 = vld [vmem:[#allocation9 + $0x308] ss:$16 sps:$4 sm:$0xff]   ;;  %v3477_v18 = vld [vmem:[#allocation9 + $0x324] ss:$16 sps:$4 sm:$0xff]   ;;  %v3480_v7 = vld [vmem:[#allocation9 + $0x32c] ss:$16 sps:$4 sm:$0xff]  }
 0x2d2   :  { %v3475_v9 = vld [vmem:[#allocation9 + $0x320] ss:$16 sps:$4 sm:$0xff]   ;;  %v3478_v10 = vld [vmem:[#allocation9 + $0x328] ss:$16 sps:$4 sm:$0xff]   ;;  %v3483_v3 = vld [vmem:[#allocation9 + $0x344] ss:$16 sps:$4 sm:$0xff]  }
 0x2d3   :  { %v1794_v37 = vadd.f32 %v1793_v58, %v1792_v42  ;;  %v3486_v61 = vld [vmem:[#allocation9 + $0x34c] ss:$16 sps:$4 sm:$0xff]   ;;  %v3481_v42 = vld [vmem:[#allocation9 + $0x340] ss:$16 sps:$4 sm:$0xff]   ;;  %v3484_v58 = vld [vmem:[#allocation9 + $0x348] ss:$16 sps:$4 sm:$0xff]  }
 0x2d5   :  { %v1796_v63 = vadd.f32 %v1795_v23, %v1794_v37  ;;  %v3489_v37 = vld [vmem:[#allocation9 + $0x364] ss:$16 sps:$4 sm:$0xff]   ;;  %v3492_v23 = vld [vmem:[#allocation9 + $0x36c] ss:$16 sps:$4 sm:$0xff]  }
 0x2d7   :  { %1797 = vst [vmem:[#allocation2 + $0x6] sm:$0x3] %v1796_v63  ;;  %v3487_v63 = vld [vmem:[#allocation9 + $0x360] ss:$16 sps:$4 sm:$0xff]  }
 0x2de   :  { %v1798_v29 = vld [vmem:[#allocation2] sm:$0xff] }
 0x2df   :  { %v1807_v24 = vrot.slane %v1798_v29, %v3850_v49  ;;  %v1800_v4 = vcombine.high %v1798_v29, %v1798_v29  ;;  %v3490_v29 = vld [vmem:[#allocation9 + $0x368] ss:$16 sps:$4 sm:$0xff]  }
 0x2e1   :  { %v1815_v40 = vcombine.high %v1807_v24, %v1807_v24  ;;  %v4458_v57 = vrot.slane %v1800_v4, %v3850_v49  ;;  %v1821_v35 = vpack.c.bf16 %v1807_v24, %v1807_v24  ;;  %v3495_v24 = vld [vmem:[#allocation9 + $0x384] ss:$16 sps:$4 sm:$0xff]   ;;  %v3498_v4 = vld [vmem:[#allocation9 + $0x38c] ss:$16 sps:$4 sm:$0xff]  }
 0x2e3   :  { %v1822_v62 = vpack.c.bf16 %v1815_v40, %v1815_v40  ;;  %v1816_v46 = vcombine.high %v4458_v57, %v4458_v57  ;;  %v3493_v40 = vld [vmem:[#allocation9 + $0x380] ss:$16 sps:$4 sm:$0xff]  }
 0x2e5   :  { %2647 = vmatprep.mubr.bf16.mxu0 %v1822_v62  ;;  %2729 = vmatprep.mubr.bf16.mxu1 %v1822_v62  ;;  %v1824_v50 = vpack.c.bf16 %v1816_v46, %v1816_v46  ;;  %v3496_v62 = vld [vmem:[#allocation9 + $0x388] ss:$16 sps:$4 sm:$0xff]   ;;  %v3499_v46 = vld [vmem:[#allocation9 + $0x3a0] ss:$16 sps:$4 sm:$0xff]  }
 0x2e6   :  { %2648 = vmatmul.mubr.bf16.vlgmr.msra.gmra.mrb[4].mxu0 %v1821_v35  ;;  %2730 = vmatmul.mubr.bf16.vlgmr.msra.gmra.mrb[4].mxu1 %v1821_v35  ;;  %v3502_v35 = vld [vmem:[#allocation9 + $0x3a8] ss:$16 sps:$4 sm:$0xff]  }
 0x2e7   :  { %2657 = vmatpush1.bf16.msra.mxu0 %v3420_v2  ;;  %2739 = vmatpush1.bf16.msra.mxu1 %v3423_v34  ;;  %v3501_v2 = vld [vmem:[#allocation9 + $0x3a4] ss:$16 sps:$4 sm:$0xff]   ;;  %v3504_v34 = vld [vmem:[#allocation9 + $0x3ac] ss:$16 sps:$4 sm:$0xff]  }
 0x2e8   :  { %2688 = vmatprep.mubr.bf16.mxu0 %v1824_v50  ;;  %2770 = vmatprep.mubr.bf16.mxu1 %v1824_v50  ;;  %v3507_v50 = vld [vmem:[#allocation9 + $0x3c4] ss:$16 sps:$4 sm:$0xff]  }
 0x2e9   :  { %2658 = vmatprep.subr.bf16.mxu0 %v3429_v41  ;;  %2740 = vmatprep.subr.bf16.mxu1 %v3432_v53  ;;  %v3510_v41 = vld [vmem:[#allocation9 + $0x3cc] ss:$16 sps:$4 sm:$0xff]   ;;  %v3505_v53 = vld [vmem:[#allocation9 + $0x3c0] ss:$16 sps:$4 sm:$0xff]  }
 0x2eb   :  { %2659 = vmatpush1.bf16.msra.mxu0 %v3427_v20  ;;  %2741 = vmatpush1.bf16.msra.mxu1 %v3430_v30  ;;  %v3508_v20 = vld [vmem:[#allocation9 + $0x3c8] ss:$16 sps:$4 sm:$0xff]   ;;  %v3513_v30 = vld [vmem:[#allocation9 + $0x3e4] ss:$16 sps:$4 sm:$0xff]  }
 0x2ec   :  { %2660 = vmatprep.subr.bf16.mxu0 %v3435_v55  ;;  %2742 = vmatprep.subr.bf16.mxu1 %v3438_v48  ;;  %v3516_v55 = vld [vmem:[#allocation9 + $0x3ec] ss:$16 sps:$4 sm:$0xff]   ;;  %v3511_v48 = vld [vmem:[#allocation9 + $0x3e0] ss:$16 sps:$4 sm:$0xff]  }
 0x2ef   :  { %2661 = vmatpush1.bf16.msra.mxu0 %v3433_v17  ;;  %2743 = vmatpush1.bf16.msra.mxu1 %v3436_v8  ;;  %v3514_v17 = vld [vmem:[#allocation9 + $0x3e8] ss:$16 sps:$4 sm:$0xff]   ;;  %v1823_v8 = vpack.c.bf16 %v4458_v57, %v4458_v57 }
 0x2f0   :  { %2662 = vmatprep.subr.bf16.mxu0 %v3441_v15  ;;  %2744 = vmatprep.subr.bf16.mxu1 %v3444_v19  ;;  %v1957_v15 = vsub.s32 0, %v3847_v43  ;;  %v1965_v19 = vsub.s32 2, %v3847_v43 }
 0x2f3   :  { %2663 = vmatpush1.bf16.msra.mxu0 %v3439_v0  ;;  %2745 = vmatpush1.bf16.msra.mxu1 %v3442_v1  ;;  %v1953_v0 = vld [vmem:[#allocation11] sm:$0xf]  ;;  %v1961_v1 = vsub.s32 1, %v3847_v43 }
 0x2f4   :  { %2664 = vmatprep.subr.bf16.mxu0 %v3447_v27  ;;  %2746 = vmatprep.subr.bf16.mxu1 %v3450_v13  ;;  %v1969_v27 = vsub.s32 3, %v3847_v43  ;;  %v1958_v13 = vrot.slane %v1953_v0, %v1957_v15 }
 0x2f7   :  { %2665 = vmatpush1.bf16.msra.mxu0 %v3445_v21  ;;  %2747 = vmatpush1.bf16.msra.mxu1 %v3448_v56  ;;  %v1966_v21 = vrot.slane %v1953_v0, %v1965_v19  ;;  %v1962_v56 = vrot.slane %v1953_v0, %v1961_v1 }
 0x2f8   :  { %2666 = vmatprep.subr.bf16.mxu0 %v3453_v12  ;;  %2748 = vmatprep.subr.bf16.mxu1 %v3456_v32  ;;  %v1970_v12 = vrot.slane %v1953_v0, %v1969_v27 }
 0x2fb   :  { %2667 = vmatpush1.bf16.msra.mxu0 %v3451_v59  ;;  %2749 = vmatpush1.bf16.msra.mxu1 %v3454_v52 }
 0x2fc   :  { %2668 = vmatprep.subr.bf16.mxu0 %v3459_v60  ;;  %2750 = vmatprep.subr.bf16.mxu1 %v3462_v47 }
 0x2ff   :  { %2669 = vmatpush1.bf16.msra.mxu0 %v3457_v33  ;;  %2751 = vmatpush1.bf16.msra.mxu1 %v3460_v44 }
 0x300   :  { %2670 = vmatprep.subr.bf16.mxu0 %v3465_v6  ;;  %2752 = vmatprep.subr.bf16.mxu1 %v3468_v11 }
 0x303   :  { %2671 = vmatpush1.bf16.msra.mxu0 %v3463_v54  ;;  %2753 = vmatpush1.bf16.msra.mxu1 %v3466_v31 }
 0x304   :  { %2672 = vmatprep.subr.bf16.mxu0 %v3471_v22  ;;  %2754 = vmatprep.subr.bf16.mxu1 %v3474_v16 }
 0x307   :  { %2673 = vmatpush1.bf16.msra.mxu0 %v3469_v36  ;;  %2755 = vmatpush1.bf16.msra.mxu1 %v3472_v51 }
 0x308   :  { %2674 = vmatprep.subr.bf16.mxu0 %v3477_v18  ;;  %2756 = vmatprep.subr.bf16.mxu1 %v3480_v7 }
 0x30b   :  { %2675 = vmatpush1.bf16.msra.mxu0 %v3475_v9  ;;  %2757 = vmatpush1.bf16.msra.mxu1 %v3478_v10 }
 0x30c   :  { %2676 = vmatprep.subr.bf16.mxu0 %v3483_v3  ;;  %2758 = vmatprep.subr.bf16.mxu1 %v3486_v61 }
 0x30f   :  { %2677 = vmatpush1.bf16.msra.mxu0 %v3481_v42  ;;  %2759 = vmatpush1.bf16.msra.mxu1 %v3484_v58 }
 0x310   :  { %2678 = vmatprep.subr.bf16.mxu0 %v3489_v37  ;;  %2760 = vmatprep.subr.bf16.mxu1 %v3492_v23 }
 0x313   :  { %2679 = vmatpush1.bf16.msra.mxu0 %v3487_v63  ;;  %2761 = vmatpush1.bf16.msra.mxu1 %v3490_v29 }
 0x314   :  { %2680 = vmatprep.subr.bf16.mxu0 %v3495_v24  ;;  %2762 = vmatprep.subr.bf16.mxu1 %v3498_v4 }
 0x317   :  { %2681 = vmatpush1.bf16.msra.mxu0 %v3493_v40  ;;  %2763 = vmatpush1.bf16.msra.mxu1 %v3496_v62 }
 0x318   :  { %2682 = vmatprep.subr.bf16.mxu0 %v3501_v2  ;;  %2764 = vmatprep.subr.bf16.mxu1 %v3504_v34 }
 0x31b   :  { %2683 = vmatpush1.bf16.msra.mxu0 %v3499_v46  ;;  %2765 = vmatpush1.bf16.msra.mxu1 %v3502_v35 }
 0x31c   :  { %2684 = vmatprep.subr.bf16.mxu0 %v3507_v50  ;;  %2766 = vmatprep.subr.bf16.mxu1 %v3510_v41 }
 0x31f   :  { %2685 = vmatpush1.bf16.msra.mxu0 %v3505_v53  ;;  %2767 = vmatpush1.bf16.msra.mxu1 %v3508_v20 }
 0x320   :  { %2686 = vmatprep.subr.bf16.mxu0 %v3513_v30  ;;  %2768 = vmatprep.subr.bf16.mxu1 %v3516_v55 }
 0x323   :  { %2687 = vmatpush1.bf16.msra.mxu0 %v3511_v48  ;;  %2769 = vmatpush1.bf16.msra.mxu1 %v3514_v17 }
 0x326   :  { %2689 = vmatmul.mubr.bf16.vlgmr.msra.gmra.mrb[4].mxu0 %v1823_v8  ;;  %2771 = vmatmul.mubr.bf16.vlgmr.msra.gmra.mrb[4].mxu1 %v1823_v8 }
 0x3f9   :  { %v2690_v32 = vpop.f32.mrb[4].mxu0  ;;  %v2772_v59 = vpop.f32.mrb[4].mxu1 }
 0x3fa   :  { %v3092_v52 = vadd.f32 %v2690_v32, %v1958_v13  ;;  %v3094_v60 = vadd.f32 %v2772_v59, %v1966_v21  ;;  %v2692_v57 = vpop.f32.mrb[5].mxu0  ;;  %v2774_v47 = vpop.f32.mrb[5].mxu1 }
 0x3fb   :  { %v3093_v33 = vadd.f32 %v2692_v57, %v1962_v56  ;;  %v3095_v44 = vadd.f32 %v2774_v47, %v1970_v12  ;;  %v2694_v6 = vpop.f32.mrb[6].mxu0  ;;  %v2776_v11 = vpop.f32.mrb[6].mxu1 }
 0x3fc   :  { %v2695_v54 = vpop.f32.mrb[7].mxu0  ;;  %v2777_v31 = vpop.f32.mrb[7].mxu1 }
 0x3fd   :  { %v2783_v22 = vcombine.low %v3092_v52, %v3093_v33  ;;  %v2784_v16 = vcombine.low %v3094_v60, %v3095_v44 }
 0x3ff   :  { %v2791_v43 = vrot.slane %v2783_v22, %v3850_v49  ;;  %v2798_v36 = vrot.slane %v2784_v16, %v3850_v49 }
 0x401   :  { %v2799_v51 = vcombine.low %v2791_v43, %v2798_v36 }
 0x403   :  { %v2801_v18 = vadd.f32 %v2799_v51, %v4188_v25  ;;  %v2802_v7 = vadd.f32 %v2799_v51, %v4190_v38  ;;  %v2803_v9 = vadd.f32 %v2799_v51, %v4192_v26  ;;  %v2804_v10 = vadd.f32 %v2799_v51, %v4202_v39 }
 0x404   :  { %v2805_v3 = vadd.f32 %v2799_v51, %v4212_v14  ;;  %v2806_v61 = vadd.f32 %v2799_v51, %v4214_v28  ;;  %v2807_v42 = vadd.f32 %v2799_v51, %v4228_v45  ;;  %v2808_v58 = vadd.f32 %v2799_v51, %v4230_v5 }
 0x405   :  { %2809 = vst [vmem:[#allocation12] sm:$0xff] %v2801_v18  ;;  %2810 = vst [vmem:[#allocation12 + $0x8] sm:$0xff] %v2802_v7 }
 0x406   :  { %2811 = vst [vmem:[#allocation12 + $0x10] sm:$0xff] %v2803_v9  ;;  %2812 = vst [vmem:[#allocation12 + $0x18] sm:$0xff] %v2804_v10 }
 0x407   :  { %2813 = vst [vmem:[#allocation12 + $0x20] sm:$0xff] %v2805_v3  ;;  %2814 = vst [vmem:[#allocation12 + $0x28] sm:$0xff] %v2806_v61 }
 0x408   :  { %2815 = vst [vmem:[#allocation12 + $0x30] sm:$0xff] %v2807_v42  ;;  %2816 = vst [vmem:[#allocation12 + $0x38] sm:$0xff] %v2808_v58 }
 0x409   :  { %3710 = shalt.err (!%p3707_p2)
}
 0x40a   :  { %s3711_s17 = scalar_lea.hbm %s4499_s6, 1024 }
 0x40b   :  { %p3712_p3 = scmp.ne.s32.totalorder %s4499_s6, %s3711_s17  ;;  %p3715_p4 = scmp.lt.u32.totalorder %s3711_s17, %s4499_s6 }
 0x40d   :  { %p3717_p5 = pnand %p3715_p4, %p3712_p3 }
 0x40f   :  { %3720 = shalt.err (!%p3717_p5)
}
 0x410   :  { %2828 = dma.vmem_to_hbm [thread:$0]  %s2823_s12, 1024, %s4499_s6, [#allocation5], %s3730_s7, %s3730_s7, %s3731_s8  }
 0x411   :  { %3727 = dma.done.wait [#allocation5], 1024  }
 0x412   :  { %3728 = vsyncadd [#allocation5], 4294966272 }
 0x413   :  { %2832 = vsyncpa [#allocation4], 1 }
 0x414   :  { %2833 = vsyncpa [#allocation7], 1 }
 0x415   :  { %2834 = vsyncpa [#allocation10], 1 }
 0x416   :  { %2835 = vsyncpa [#allocation5], 1 }

</bundles_post_ra>
